<compile_context>
chip_gen: v7x
topology: tpu7x:2x2x1
jax: 0.10.0
libtpu: 0.0.40
codegen_flags: <defaults>
</compile_context>

<pallas_src>
import functools
import math

import jax
import jax.numpy as jnp
import numpy as np
from jax import lax
from jax.experimental import pallas as pl
from jax.experimental.pallas import tpu as pltpu


def _round_up(n, m):
    return ((n + m - 1) // m) * m


def _pad_axis(a, axis, new_size):
    pad = new_size - a.shape[axis]
    if pad == 0:
        return a
    widths = [(0, 0)] * a.ndim
    widths[axis] = (0, pad)
    return jnp.pad(a, widths)


# --------------------- Calcium_Encoder: bidirectional GRU -------------------
def bigru_kernel(x_ref, h0_ref, w6_ref, b6_ref, whc_ref, bhn_ref,
                 raw_ref, gi_scr, *, clip_val):
    """Fused bidirectional GRU step over one batch block.

    x_ref   : (T, B, 2I)  augmented input [x_t | x_{T-1-t}]
    h0_ref  : (B, 2Hp)    fused initial state [hf0 | hb0]
    w6_ref  : (2I, 6Hp)   hoisted input-projection weights (gate-major cols)
    b6_ref  : (1, 6Hp)    folded biases (b_ih + b_hh for r,z; b_ih for n)
    whc_ref : (2Hp, 6Hp)  fused hidden->gates weights (block over [hf|hb])
    bhn_ref : (1, 2Hp)    b_hh n-gate biases [fwd | bwd]
    raw_ref : (T, B, 2Hp) per-step clipped [hf_t | hb at step t] (bwd half is
                          time-reversed; wrapper un-reverses and un-pads)
    """
    T, B, _ = x_ref.shape
    H2 = h0_ref.shape[-1]                 # 2*Hp == 128-multiple -> lane-dense

    # ---- hoisted input projection: one MXU matmul for both directions, all T.
    x2 = x_ref[...].reshape(T * B, x_ref.shape[-1])
    gi = jnp.dot(x2, w6_ref[...], preferred_element_type=jnp.float32) + b6_ref[...]
    gi_scr[...] = gi.reshape(T, B, 3 * H2)

    whc = whc_ref[...]
    bhn = bhn_ref[...]

    def body(t, h):
        gi_t = gi_scr[t]                                   # (B, 6Hp) lane-dense
        # single fused MXU matmul for both directions
        gh = jnp.dot(h, whc, preferred_element_type=jnp.float32)
        r = jax.nn.sigmoid(gi_t[:, :H2] + gh[:, :H2])          # 128-wide slices
        z = jax.nn.sigmoid(gi_t[:, H2:2 * H2] + gh[:, H2:2 * H2])
        n = jnp.tanh(gi_t[:, 2 * H2:] + r * (gh[:, 2 * H2:] + bhn))
        h_new = (1.0 - z) * n + z * h
        # PyTorch clamps only the recorded outputs, not the carried state.
        raw_ref[t] = jnp.clip(h_new, -clip_val, clip_val)       # lane-dense vst
        return h_new

    lax.fori_loop(0, T, body, h0_ref[...], unroll=True)


def _split_gates(w, H):
    return w[:, :H], w[:, H:2 * H], w[:, 2 * H:3 * H]


def _pad_cols(a, Hp):
    return jnp.pad(a, ((0, 0), (0, Hp - a.shape[1])))


def _pack_bigru_weights(p, H, Hp):
    """Build fused weights in the gate-major / direction-minor column layout
    [r_f | r_b | z_f | z_b | n_f | n_b] (each Hp wide -> 128-aligned slices)."""
    # Input projection: rows [0:I] act on x[t] (fwd), rows [I:2I] on x[T-1-t] (bwd).
    rf, zf, nf = (_pad_cols(g, Hp) for g in _split_gates(p["w_ih_f"], H))
    rb, zb, nb = (_pad_cols(g, Hp) for g in _split_gates(p["w_ih_b"], H))
    Zi = jnp.zeros_like(rf)
    w6 = jnp.concatenate([
        jnp.concatenate([rf, Zi, zf, Zi, nf, Zi], axis=1),
        jnp.concatenate([Zi, rb, Zi, zb, Zi, nb], axis=1),
    ], axis=0)                                                   # (2I, 6Hp)

    # Folded input-side bias: b_ih + b_hh for r,z; only b_ih for n (b_hh_n
    # must stay inside the r*(...) term).
    def fold(b_ih, b_hh):
        r_i, z_i, n_i = _split_gates(b_ih, H)
        r_h, z_h, _ = _split_gates(b_hh, H)
        return (_pad_cols(r_i + r_h, Hp), _pad_cols(z_i + z_h, Hp),
                _pad_cols(n_i, Hp))

    brf, bzf, bnf = fold(p["b_ih_f"], p["b_hh_f"])
    brb, bzb, bnb = fold(p["b_ih_b"], p["b_hh_b"])
    b6 = jnp.concatenate([brf, brb, bzf, bzb, bnf, bnb], axis=1)  # (1, 6Hp)

    # Fused hidden->gates weight: rows [0:Hp] read hf, rows [Hp:2Hp] read hb.
    rhf, zhf, nhf = (_pad_cols(g, Hp) for g in _split_gates(p["w_hh_f"], H))
    rhb, zhb, nhb = (_pad_cols(g, Hp) for g in _split_gates(p["w_hh_b"], H))
    Zh = jnp.zeros_like(rhf)
    top = jnp.concatenate([rhf, Zh, zhf, Zh, nhf, Zh], axis=1)    # (H, 6Hp)
    bot = jnp.concatenate([Zh, rhb, Zh, zhb, Zh, nhb], axis=1)    # (H, 6Hp)
    whc = jnp.concatenate([jnp.pad(top, ((0, Hp - H), (0, 0))),
                           jnp.pad(bot, ((0, Hp - H), (0, 0)))], axis=0)  # (2Hp, 6Hp)

    bhn = jnp.concatenate([_pad_cols(p["b_hh_f"][:, 2 * H:], Hp),
                           _pad_cols(p["b_hh_b"][:, 2 * H:], Hp)], axis=1)  # (1, 2Hp)
    return w6, b6, whc, bhn


def calcium_encoder(x, h0, p, clip_val, *, block_b=8):
    """x: (T, B, I) f32; h0: (2, B, H) f32. Returns clamped (T, B, 2H)."""
    T, B, I = x.shape
    H = h0.shape[-1]
    Hp = _round_up(H, 64)                 # 2*Hp multiple of 128 -> lane-dense
    Bp = _round_up(max(B, block_b), block_b)
    nb = Bp // block_b

    xp = _pad_axis(x, 1, Bp)                                   # (T, Bp, I)
    # augmented input [x_t | x_{T-1-t}]: folds the backward time-reversal into
    # the hoisted projection so the per-step scratch row is already in order.
    x_aug = jnp.concatenate([xp, xp[::-1]], axis=-1)           # (T, Bp, 2I)

    h0p = jnp.pad(h0, ((0, 0), (0, Bp - B), (0, Hp - H)))      # (2, Bp, Hp)
    h0_cat = jnp.concatenate([h0p[0], h0p[1]], axis=-1)        # (Bp, 2Hp)

    w6, b6, whc, bhn = _pack_bigru_weights(p, H, Hp)

    raw = pl.pallas_call(
        functools.partial(bigru_kernel, clip_val=clip_val),
        out_shape=jax.ShapeDtypeStruct((T, Bp, 2 * Hp), jnp.float32),
        grid_spec=pltpu.PrefetchScalarGridSpec(
            num_scalar_prefetch=0,
            grid=(nb,),                                        # batch chunks
            in_specs=[
                pl.BlockSpec((T, block_b, 2 * I), lambda i: (0, i, 0)),
                pl.BlockSpec((block_b, 2 * Hp), lambda i: (i, 0)),
                pl.BlockSpec((2 * I, 6 * Hp), lambda i: (0, 0)),
                pl.BlockSpec((1, 6 * Hp), lambda i: (0, 0)),
                pl.BlockSpec((2 * Hp, 6 * Hp), lambda i: (0, 0)),
                pl.BlockSpec((1, 2 * Hp), lambda i: (0, 0)),
            ],
            out_specs=pl.BlockSpec((T, block_b, 2 * Hp), lambda i: (0, i, 0)),
            scratch_shapes=[pltpu.VMEM((T, block_b, 6 * Hp), jnp.float32)],
        ),
        compiler_params=pltpu.CompilerParams(
            dimension_semantics=("parallel",)),                # megacore on v7x
    )(x_aug, h0_cat, w6, b6, whc, bhn)

    # un-pad + un-reverse the backward half (backward output at time s was
    # written at loop step T-1-s).
    hf = raw[:, :B, :H]
    hb = raw[::-1, :B, Hp:Hp + H]
    return jnp.concatenate([hf, hb], axis=-1)


# ------------- Calcium_Generator: Spike_Generator + AR1_Calcium -------------
def calcium_gen_kernel(gin_ref, c0_ref, w_ref, b_ref, l_ref, p_ref,
                       cal_ref, spike_ref, *, gain, bias):
    T, B, G = gin_ref.shape
    N = w_ref.shape[-1]

    # ---- Spike_Generator hoisted for all T: one MXU matmul + one EUP pass.
    x2 = gin_ref[...].reshape(T * B, G)
    logits = jnp.dot(x2, w_ref[...], preferred_element_type=jnp.float32) + b_ref[...]
    spike = jnp.maximum(jnp.exp(logits) - 1.0, 0.0)             # (T*B, N)
    spike_ref[...] = spike.reshape(T, B, N)

    # ---- AR1_Calcium as one lower-triangular decay matmul (no serial scan):
    #   c_t = decay^(t+1) * c0 + sum_{k<=t} decay^(t-k) * (gain*s_k + bias)
    # l_ref = kron(L, I_B) with L[t,k] = decay^(t-k);  p_ref = kron(decay^(t+1), I_B).
    drive = gain * spike + bias                                  # (T*B, N)
    cal = (jnp.dot(l_ref[...], drive, preferred_element_type=jnp.float32)
           + jnp.dot(p_ref[...], c0_ref[...], preferred_element_type=jnp.float32))
    cal_ref[...] = cal.reshape(T, B, N)


def calcium_generator(gen_input, calcium0, p, ar1, *, block_b=8):
    """gen_input: (T, B, L+F); calcium0: (B, input_size)."""
    T, B, G = gen_input.shape
    N = calcium0.shape[-1]
    Bp = _round_up(max(B, block_b), block_b)
    nb = Bp // block_b

    ginp = _pad_axis(gen_input, 1, Bp)
    c0p = _pad_axis(calcium0, 0, Bp)

    # TODO(synk): decay matrices are built at trace time from a static
    # (non-learnable) logtau, matching the default AR1_Calcium config; a
    # learnable logtau would need these built from a traced scalar (or an
    # in-kernel scan fallback).
    decay = 1.0 - 1.0 / math.exp(ar1["logtau"])
    t_idx = np.arange(T)
    diff = t_idx[:, None] - t_idx[None, :]
    L = np.where(diff >= 0, float(decay) ** np.clip(diff, 0, None), 0.0)
    L = L.astype(np.float32)                                    # (T, T)
    pows = (float(decay) ** (t_idx + 1)).astype(np.float32)[:, None]  # (T, 1)
    eye = np.eye(block_b, dtype=np.float32)
    l_big = jnp.asarray(np.kron(L, eye))                        # (T*Bb, T*Bb)
    p_big = jnp.asarray(np.kron(pows, eye))                     # (T*Bb, Bb)

    cal, spike = pl.pallas_call(
        functools.partial(calcium_gen_kernel, gain=ar1["gain"], bias=ar1["bias"]),
        out_shape=(jax.ShapeDtypeStruct((T, Bp, N), jnp.float32),
                   jax.ShapeDtypeStruct((T, Bp, N), jnp.float32)),
        grid_spec=pltpu.PrefetchScalarGridSpec(
            num_scalar_prefetch=0,
            grid=(nb,),
            in_specs=[
                pl.BlockSpec((T, block_b, G), lambda i: (0, i, 0)),
                pl.BlockSpec((block_b, N), lambda i: (i, 0)),
                pl.BlockSpec((G, N), lambda i: (0, 0)),
                pl.BlockSpec((1, N), lambda i: (0, 0)),
                pl.BlockSpec((T * block_b, T * block_b), lambda i: (0, 0)),
                pl.BlockSpec((T * block_b, block_b), lambda i: (0, 0)),
            ],
            out_specs=(pl.BlockSpec((T, block_b, N), lambda i: (0, i, 0)),
                       pl.BlockSpec((T, block_b, N), lambda i: (0, i, 0))),
        ),
        compiler_params=pltpu.CompilerParams(
            dimension_semantics=("parallel",)),
    )(ginp, c0p, p["w_spike"], p["b_spike"], l_big, p_big)

    if Bp != B:
        cal, spike = cal[:, :B, :], spike[:, :B, :]
    return cal, spike


# ------------------------------ parameter init ------------------------------
def init_params(key, input_size, encoder_size, latent_size, factor_size):
    """Weights ~ N(0, fan_in^-0.5) (standard_init); small random biases."""
    H, I = encoder_size, input_size
    gen_in = latent_size + factor_size
    ks = jax.random.split(key, 11)

    def nrm(k, shape, fan_in):
        return jax.random.normal(k, shape, jnp.float32) * fan_in ** -0.5

    params = {
        # GRU weights pre-transposed to (in, 3H) so the kernel does x @ W.
        "w_ih_f": nrm(ks[0], (I, 3 * H), I),
        "w_hh_f": nrm(ks[1], (H, 3 * H), H),
        "b_ih_f": 0.1 * jax.random.normal(ks[2], (1, 3 * H), jnp.float32),
        "b_hh_f": 0.1 * jax.random.normal(ks[3], (1, 3 * H), jnp.float32),
        "w_ih_b": nrm(ks[4], (I, 3 * H), I),
        "w_hh_b": nrm(ks[5], (H, 3 * H), H),
        "b_ih_b": 0.1 * jax.random.normal(ks[6], (1, 3 * H), jnp.float32),
        "b_hh_b": 0.1 * jax.random.normal(ks[7], (1, 3 * H), jnp.float32),
        # fc_logspike: (in=latent+factor, out=input_size)
        "w_spike": nrm(ks[8], (gen_in, I), gen_in),
        "b_spike": 0.1 * jax.random.normal(ks[9], (1, I), jnp.float32),
        # priors (as in Calcium_Net.__init__)
        "u_prior_mean": jnp.zeros((latent_size,), jnp.float32),
        "u_prior_logvar": jnp.full((latent_size,), math.log(0.1), jnp.float32),
    }
    ar1 = {"gain": 1.0, "bias": 0.0, "logtau": math.log(10.0)}  # defaults; var unused in fwd
    return params, ar1


# ------------------------------ pure-JAX reference ---------------------------
def _gru_cell_ref(x, h, wi, wh, bi, bh, H):
    gi = x @ wi + bi
    gh = h @ wh + bh
    r = jax.nn.sigmoid(gi[:, 0:H] + gh[:, 0:H])
    z = jax.nn.sigmoid(gi[:, H:2 * H] + gh[:, H:2 * H])
    n = jnp.tanh(gi[:, 2 * H:3 * H] + r * gh[:, 2 * H:3 * H])
    return (1.0 - z) * n + z * h


def encoder_ref(x, h0, p, clip_val):
    H = h0.shape[-1]

    def mk_step(wi, wh, bi, bh):
        def step(h, xt):
            hn = _gru_cell_ref(xt, h, wi, wh, bi, bh, H)
            return hn, hn
        return step

    _, hs_f = lax.scan(mk_step(p["w_ih_f"], p["w_hh_f"], p["b_ih_f"], p["b_hh_f"]), h0[0], x)
    _, hs_b = lax.scan(mk_step(p["w_ih_b"], p["w_hh_b"], p["b_ih_b"], p["b_hh_b"]), h0[1], x[::-1])
    out = jnp.concatenate([hs_f, hs_b[::-1]], axis=-1)
    return jnp.clip(out, -clip_val, clip_val)


def generator_ref(gen_input, calcium0, p, ar1):
    decay = 1.0 - 1.0 / math.exp(ar1["logtau"])

    def step(c, xt):
        spike = jnp.maximum(jnp.exp(xt @ p["w_spike"] + p["b_spike"]) - 1.0, 0.0)
        c_new = c * decay + ar1["gain"] * spike + ar1["bias"]
        return c_new, (c_new, spike)

    _, (cal, spike) = lax.scan(step, calcium0, gen_input)
    return cal, spike


# ----------------------------------- main ------------------------------------
if __name__ == "__main__":
    T, B = 8, 2
    input_size, encoder_size = 8, 32
    latent_size, factor_size = 16, 4
    clip_val = 5.0

    key = jax.random.PRNGKey(0)
    k_par, k_x, k_eps = jax.random.split(key, 3)
    params, ar1 = init_params(k_par, input_size, encoder_size, latent_size, factor_size)

    # input spikes/fluorescence: (T, B, input_size)
    x = jax.random.normal(k_x, (T, B, input_size), jnp.float32)

    # initialize_hidden_states: encoder_init is zeros(2, H) broadcast over batch.
    h0 = jnp.zeros((2, B, encoder_size), jnp.float32)

    # --- encoder (Pallas fused bidirectional GRU) ---
    out_gru = calcium_encoder(x, h0, params, clip_val)

    # --- generator input: sample u from the prior, zero factors ---
    # TODO(synk): LFADS_ControllerCell is undefined in the source; u is sampled
    # from the prior (sample_gaussian) instead of the controller posterior.
    eps = jax.random.normal(k_eps, (T, B, latent_size), jnp.float32)
    u = jnp.exp(params["u_prior_logvar"] * 0.5) * eps + params["u_prior_mean"]
    factors = jnp.zeros((T, B, factor_size), jnp.float32)
    gen_input = jnp.concatenate([u, factors], axis=-1)

    calcium0 = jnp.zeros((B, input_size), jnp.float32)
    calcium_state, spike_state = calcium_generator(gen_input, calcium0, params, ar1)

    jax.block_until_ready((out_gru, calcium_state, spike_state))

    # correctness check vs pure-JAX reference
    out_gru_r = encoder_ref(x, h0, params, clip_val)
    cal_r, spike_r = generator_ref(gen_input, calcium0, params, ar1)
    np.testing.assert_allclose(np.asarray(out_gru), np.asarray(out_gru_r), rtol=1e-4, atol=1e-4)
    np.testing.assert_allclose(np.asarray(calcium_state), np.asarray(cal_r), rtol=1e-4, atol=1e-4)
    np.testing.assert_allclose(np.asarray(spike_state), np.asarray(spike_r), rtol=1e-4, atol=1e-4)

    print("KERNEL_OK")
</pallas_src>

<mosaic_0001>
module attributes {stable_mosaic.version = 11 : i64} {
  func.func @bigru_kernel(%arg0: i32, %arg1: memref<8x8x16xf32, #tpu.memory_space<vmem>>, %arg2: memref<8x128xf32, #tpu.memory_space<vmem>>, %arg3: memref<16x384xf32, #tpu.memory_space<vmem>>, %arg4: memref<1x384xf32, #tpu.memory_space<vmem>>, %arg5: memref<128x384xf32, #tpu.memory_space<vmem>>, %arg6: memref<1x128xf32, #tpu.memory_space<vmem>>, %arg7: memref<8x8x128xf32, #tpu.memory_space<vmem>>, %arg8: memref<8x8x384xf32, #tpu.memory_space<vmem>>) attributes {dimension_semantics = [#tpu.dimension_semantics<parallel>], iteration_bounds = array<i64: 1>, scalar_prefetch = 0 : i64, scratch_operands = 1 : i64, tpu.core_type = #tpu.core_type<tc>, window_params = [{transform_indices = @transform_0, window_bounds = array<i64: 8, 8, 16>}, {transform_indices = @transform_1, window_bounds = array<i64: 8, 128>}, {pipeline_mode = #tpu.pipeline_mode<synchronous>, transform_indices = @transform_2, window_bounds = array<i64: 16, 384>}, {pipeline_mode = #tpu.pipeline_mode<synchronous>, transform_indices = @transform_3, window_bounds = array<i64: 1, 384>}, {pipeline_mode = #tpu.pipeline_mode<synchronous>, transform_indices = @transform_4, window_bounds = array<i64: 128, 384>}, {pipeline_mode = #tpu.pipeline_mode<synchronous>, transform_indices = @transform_5, window_bounds = array<i64: 1, 128>}, {transform_indices = @transform_6, window_bounds = array<i64: 8, 8, 128>}]} {
    %c0 = arith.constant 0 : index
    %c0_0 = arith.constant 0 : index
    %c0_1 = arith.constant 0 : index
    %0 = vector.load %arg1[%c0, %c0_0, %c0_1] : memref<8x8x16xf32, #tpu.memory_space<vmem>>, vector<8x8x16xf32>
    %1 = vector.shape_cast %0 : vector<8x8x16xf32> to vector<64x16xf32>
    %c0_2 = arith.constant 0 : index
    %c0_3 = arith.constant 0 : index
    %2 = vector.load %arg3[%c0_2, %c0_3] : memref<16x384xf32, #tpu.memory_space<vmem>>, vector<16x384xf32>
    %cst = arith.constant dense<0.000000e+00> : vector<64x384xf32>
    %3 = tpu.matmul %1, %2, %cst {dimension_numbers = #tpu.dot_dimension_numbers<[1], [0], [0], [1], [0, 0, 1, 1], [], []>} : vector<64x16xf32>, vector<16x384xf32>, vector<64x384xf32> -> vector<64x384xf32>
    %c0_4 = arith.constant 0 : index
    %c0_5 = arith.constant 0 : index
    %4 = vector.load %arg4[%c0_4, %c0_5] : memref<1x384xf32, #tpu.memory_space<vmem>>, vector<1x384xf32>
    %5 = vector.broadcast %4 : vector<1x384xf32> to vector<64x384xf32>
    %6 = arith.addf %3, %5 : vector<64x384xf32>
    %7 = vector.shape_cast %6 : vector<64x384xf32> to vector<8x8x384xf32>
    %c0_6 = arith.constant 0 : index
    %c0_7 = arith.constant 0 : index
    %c0_8 = arith.constant 0 : index
    %8 = vector.load %arg8[%c0_6, %c0_7, %c0_8] : memref<8x8x384xf32, #tpu.memory_space<vmem>>, vector<8x8x384xf32>
    tpu.vector_store %arg8[%c0_6, %c0_7, %c0_8], %7 {strides = array<i32>} : memref<8x8x384xf32, #tpu.memory_space<vmem>>, vector<8x8x384xf32>,
    %c0_9 = arith.constant 0 : index
    %c0_10 = arith.constant 0 : index
    %9 = vector.load %arg5[%c0_9, %c0_10] : memref<128x384xf32, #tpu.memory_space<vmem>>, vector<128x384xf32>
    %c0_11 = arith.constant 0 : index
    %c0_12 = arith.constant 0 : index
    %10 = vector.load %arg6[%c0_11, %c0_12] : memref<1x128xf32, #tpu.memory_space<vmem>>, vector<1x128xf32>
    %c0_13 = arith.constant 0 : index
    %c0_14 = arith.constant 0 : index
    %11 = vector.load %arg2[%c0_13, %c0_14] : memref<8x128xf32, #tpu.memory_space<vmem>>, vector<8x128xf32>
    %c0_i32 = arith.constant 0 : i32
    %12 = arith.index_cast %c0_i32 : i32 to index
    %c0_15 = arith.constant 0 : index
    %c0_16 = arith.constant 0 : index
    %13 = vector.load %arg8[%12, %c0_15, %c0_16] : memref<8x8x384xf32, #tpu.memory_space<vmem>>, vector<1x8x384xf32>
    %14 = vector.shape_cast %13 : vector<1x8x384xf32> to vector<8x384xf32>
    %cst_17 = arith.constant dense<0.000000e+00> : vector<8x384xf32>
    %15 = tpu.matmul %11, %9, %cst_17 {dimension_numbers = #tpu.dot_dimension_numbers<[1], [0], [0], [1], [0, 0, 1, 1], [], []>} : vector<8x128xf32>, vector<128x384xf32>, vector<8x384xf32> -> vector<8x384xf32>
    %16 = vector.extract_strided_slice %14 {offsets = [0, 0], sizes = [8, 128], strides = [1, 1]} : vector<8x384xf32> to vector<8x128xf32>
    %17 = vector.extract_strided_slice %15 {offsets = [0, 0], sizes = [8, 128], strides = [1, 1]} : vector<8x384xf32> to vector<8x128xf32>
    %18 = arith.addf %16, %17 : vector<8x128xf32>
    %19 = arith.negf %18 : vector<8x128xf32>
    %20 = math.exp %19 : vector<8x128xf32>
    %cst_18 = arith.constant 1.000000e+00 : f32
    %21 = vector.broadcast %cst_18 : f32 to vector<8x128xf32>
    %22 = arith.addf %21, %20 : vector<8x128xf32>
    %23 = arith.divf %21, %22 : vector<8x128xf32>
    %24 = vector.extract_strided_slice %14 {offsets = [0, 128], sizes = [8, 128], strides = [1, 1]} : vector<8x384xf32> to vector<8x128xf32>
    %25 = vector.extract_strided_slice %15 {offsets = [0, 128], sizes = [8, 128], strides = [1, 1]} : vector<8x384xf32> to vector<8x128xf32>
    %26 = arith.addf %24, %25 : vector<8x128xf32>
    %27 = arith.negf %26 : vector<8x128xf32>
    %28 = math.exp %27 : vector<8x128xf32>
    %cst_19 = arith.constant 1.000000e+00 : f32
    %29 = vector.broadcast %cst_19 : f32 to vector<8x128xf32>
    %30 = arith.addf %29, %28 : vector<8x128xf32>
    %31 = arith.divf %29, %30 : vector<8x128xf32>
    %32 = vector.extract_strided_slice %14 {offsets = [0, 256], sizes = [8, 128], strides = [1, 1]} : vector<8x384xf32> to vector<8x128xf32>
    %33 = vector.extract_strided_slice %15 {offsets = [0, 256], sizes = [8, 128], strides = [1, 1]} : vector<8x384xf32> to vector<8x128xf32>
    %34 = vector.broadcast %10 : vector<1x128xf32> to vector<8x128xf32>
    %35 = arith.addf %33, %34 : vector<8x128xf32>
    %36 = arith.mulf %23, %35 : vector<8x128xf32>
    %37 = arith.addf %32, %36 : vector<8x128xf32>
    %38 = math.tanh %37 : vector<8x128xf32>
    %cst_20 = arith.constant 1.000000e+00 : f32
    %39 = vector.broadcast %cst_20 : f32 to vector<8x128xf32>
    %40 = arith.subf %39, %31 : vector<8x128xf32>
    %41 = arith.mulf %40, %38 : vector<8x128xf32>
    %42 = arith.mulf %31, %11 : vector<8x128xf32>
    %43 = arith.addf %41, %42 : vector<8x128xf32>
    %cst_21 = arith.constant -5.000000e+00 : f32
    %cst_22 = arith.constant 5.000000e+00 : f32
    %44 = vector.broadcast %cst_21 : f32 to vector<8x128xf32>
    %45 = arith.maximumf %44, %43 : vector<8x128xf32>
    %46 = vector.broadcast %cst_22 : f32 to vector<8x128xf32>
    %47 = arith.minimumf %46, %45 : vector<8x128xf32>
    %48 = arith.index_cast %c0_i32 : i32 to index
    %c0_23 = arith.constant 0 : index
    %c0_24 = arith.constant 0 : index
    %49 = vector.load %arg7[%48, %c0_23, %c0_24] : memref<8x8x128xf32, #tpu.memory_space<vmem>>, vector<1x8x128xf32>
    %50 = vector.shape_cast %49 : vector<1x8x128xf32> to vector<8x128xf32>
    %51 = vector.shape_cast %47 : vector<8x128xf32> to vector<1x8x128xf32>
    tpu.vector_store %arg7[%48, %c0_23, %c0_24], %51 {strides = array<i32>} : memref<8x8x128xf32, #tpu.memory_space<vmem>>, vector<1x8x128xf32>,
    %c1_i32 = arith.constant 1 : i32
    %52 = arith.index_cast %c1_i32 : i32 to index
    %c0_25 = arith.constant 0 : index
    %c0_26 = arith.constant 0 : index
    %53 = vector.load %arg8[%52, %c0_25, %c0_26] : memref<8x8x384xf32, #tpu.memory_space<vmem>>, vector<1x8x384xf32>
    %54 = vector.shape_cast %53 : vector<1x8x384xf32> to vector<8x384xf32>
    %cst_27 = arith.constant dense<0.000000e+00> : vector<8x384xf32>
    %55 = tpu.matmul %43, %9, %cst_27 {dimension_numbers = #tpu.dot_dimension_numbers<[1], [0], [0], [1], [0, 0, 1, 1], [], []>} : vector<8x128xf32>, vector<128x384xf32>, vector<8x384xf32> -> vector<8x384xf32>
    %56 = vector.extract_strided_slice %54 {offsets = [0, 0], sizes = [8, 128], strides = [1, 1]} : vector<8x384xf32> to vector<8x128xf32>
    %57 = vector.extract_strided_slice %55 {offsets = [0, 0], sizes = [8, 128], strides = [1, 1]} : vector<8x384xf32> to vector<8x128xf32>
    %58 = arith.addf %56, %57 : vector<8x128xf32>
    %59 = arith.negf %58 : vector<8x128xf32>
    %60 = math.exp %59 : vector<8x128xf32>
    %cst_28 = arith.constant 1.000000e+00 : f32
    %61 = vector.broadcast %cst_28 : f32 to vector<8x128xf32>
    %62 = arith.addf %61, %60 : vector<8x128xf32>
    %63 = arith.divf %61, %62 : vector<8x128xf32>
    %64 = vector.extract_strided_slice %54 {offsets = [0, 128], sizes = [8, 128], strides = [1, 1]} : vector<8x384xf32> to vector<8x128xf32>
    %65 = vector.extract_strided_slice %55 {offsets = [0, 128], sizes = [8, 128], strides = [1, 1]} : vector<8x384xf32> to vector<8x128xf32>
    %66 = arith.addf %64, %65 : vector<8x128xf32>
    %67 = arith.negf %66 : vector<8x128xf32>
    %68 = math.exp %67 : vector<8x128xf32>
    %cst_29 = arith.constant 1.000000e+00 : f32
    %69 = vector.broadcast %cst_29 : f32 to vector<8x128xf32>
    %70 = arith.addf %69, %68 : vector<8x128xf32>
    %71 = arith.divf %69, %70 : vector<8x128xf32>
    %72 = vector.extract_strided_slice %54 {offsets = [0, 256], sizes = [8, 128], strides = [1, 1]} : vector<8x384xf32> to vector<8x128xf32>
    %73 = vector.extract_strided_slice %55 {offsets = [0, 256], sizes = [8, 128], strides = [1, 1]} : vector<8x384xf32> to vector<8x128xf32>
    %74 = vector.broadcast %10 : vector<1x128xf32> to vector<8x128xf32>
    %75 = arith.addf %73, %74 : vector<8x128xf32>
    %76 = arith.mulf %63, %75 : vector<8x128xf32>
    %77 = arith.addf %72, %76 : vector<8x128xf32>
    %78 = math.tanh %77 : vector<8x128xf32>
    %cst_30 = arith.constant 1.000000e+00 : f32
    %79 = vector.broadcast %cst_30 : f32 to vector<8x128xf32>
    %80 = arith.subf %79, %71 : vector<8x128xf32>
    %81 = arith.mulf %80, %78 : vector<8x128xf32>
    %82 = arith.mulf %71, %43 : vector<8x128xf32>
    %83 = arith.addf %81, %82 : vector<8x128xf32>
    %cst_31 = arith.constant -5.000000e+00 : f32
    %cst_32 = arith.constant 5.000000e+00 : f32
    %84 = vector.broadcast %cst_31 : f32 to vector<8x128xf32>
    %85 = arith.maximumf %84, %83 : vector<8x128xf32>
    %86 = vector.broadcast %cst_32 : f32 to vector<8x128xf32>
    %87 = arith.minimumf %86, %85 : vector<8x128xf32>
    %88 = arith.index_cast %c1_i32 : i32 to index
    %c0_33 = arith.constant 0 : index
    %c0_34 = arith.constant 0 : index
    %89 = vector.load %arg7[%88, %c0_33, %c0_34] : memref<8x8x128xf32, #tpu.memory_space<vmem>>, vector<1x8x128xf32>
    %90 = vector.shape_cast %89 : vector<1x8x128xf32> to vector<8x128xf32>
    %91 = vector.shape_cast %87 : vector<8x128xf32> to vector<1x8x128xf32>
    tpu.vector_store %arg7[%88, %c0_33, %c0_34], %91 {strides = array<i32>} : memref<8x8x128xf32, #tpu.memory_space<vmem>>, vector<1x8x128xf32>,
    %c2_i32 = arith.constant 2 : i32
    %92 = arith.index_cast %c2_i32 : i32 to index
    %c0_35 = arith.constant 0 : index
    %c0_36 = arith.constant 0 : index
    %93 = vector.load %arg8[%92, %c0_35, %c0_36] : memref<8x8x384xf32, #tpu.memory_space<vmem>>, vector<1x8x384xf32>
    %94 = vector.shape_cast %93 : vector<1x8x384xf32> to vector<8x384xf32>
    %cst_37 = arith.constant dense<0.000000e+00> : vector<8x384xf32>
    %95 = tpu.matmul %83, %9, %cst_37 {dimension_numbers = #tpu.dot_dimension_numbers<[1], [0], [0], [1], [0, 0, 1, 1], [], []>} : vector<8x128xf32>, vector<128x384xf32>, vector<8x384xf32> -> vector<8x384xf32>
    %96 = vector.extract_strided_slice %94 {offsets = [0, 0], sizes = [8, 128], strides = [1, 1]} : vector<8x384xf32> to vector<8x128xf32>
    %97 = vector.extract_strided_slice %95 {offsets = [0, 0], sizes = [8, 128], strides = [1, 1]} : vector<8x384xf32> to vector<8x128xf32>
    %98 = arith.addf %96, %97 : vector<8x128xf32>
    %99 = arith.negf %98 : vector<8x128xf32>
    %100 = math.exp %99 : vector<8x128xf32>
    %cst_38 = arith.constant 1.000000e+00 : f32
    %101 = vector.broadcast %cst_38 : f32 to vector<8x128xf32>
    %102 = arith.addf %101, %100 : vector<8x128xf32>
    %103 = arith.divf %101, %102 : vector<8x128xf32>
    %104 = vector.extract_strided_slice %94 {offsets = [0, 128], sizes = [8, 128], strides = [1, 1]} : vector<8x384xf32> to vector<8x128xf32>
    %105 = vector.extract_strided_slice %95 {offsets = [0, 128], sizes = [8, 128], strides = [1, 1]} : vector<8x384xf32> to vector<8x128xf32>
    %106 = arith.addf %104, %105 : vector<8x128xf32>
    %107 = arith.negf %106 : vector<8x128xf32>
    %108 = math.exp %107 : vector<8x128xf32>
    %cst_39 = arith.constant 1.000000e+00 : f32
    %109 = vector.broadcast %cst_39 : f32 to vector<8x128xf32>
    %110 = arith.addf %109, %108 : vector<8x128xf32>
    %111 = arith.divf %109, %110 : vector<8x128xf32>
    %112 = vector.extract_strided_slice %94 {offsets = [0, 256], sizes = [8, 128], strides = [1, 1]} : vector<8x384xf32> to vector<8x128xf32>
    %113 = vector.extract_strided_slice %95 {offsets = [0, 256], sizes = [8, 128], strides = [1, 1]} : vector<8x384xf32> to vector<8x128xf32>
    %114 = vector.broadcast %10 : vector<1x128xf32> to vector<8x128xf32>
    %115 = arith.addf %113, %114 : vector<8x128xf32>
    %116 = arith.mulf %103, %115 : vector<8x128xf32>
    %117 = arith.addf %112, %116 : vector<8x128xf32>
    %118 = math.tanh %117 : vector<8x128xf32>
    %cst_40 = arith.constant 1.000000e+00 : f32
    %119 = vector.broadcast %cst_40 : f32 to vector<8x128xf32>
    %120 = arith.subf %119, %111 : vector<8x128xf32>
    %121 = arith.mulf %120, %118 : vector<8x128xf32>
    %122 = arith.mulf %111, %83 : vector<8x128xf32>
    %123 = arith.addf %121, %122 : vector<8x128xf32>
    %cst_41 = arith.constant -5.000000e+00 : f32
    %cst_42 = arith.constant 5.000000e+00 : f32
    %124 = vector.broadcast %cst_41 : f32 to vector<8x128xf32>
    %125 = arith.maximumf %124, %123 : vector<8x128xf32>
    %126 = vector.broadcast %cst_42 : f32 to vector<8x128xf32>
    %127 = arith.minimumf %126, %125 : vector<8x128xf32>
    %128 = arith.index_cast %c2_i32 : i32 to index
    %c0_43 = arith.constant 0 : index
    %c0_44 = arith.constant 0 : index
    %129 = vector.load %arg7[%128, %c0_43, %c0_44] : memref<8x8x128xf32, #tpu.memory_space<vmem>>, vector<1x8x128xf32>
    %130 = vector.shape_cast %129 : vector<1x8x128xf32> to vector<8x128xf32>
    %131 = vector.shape_cast %127 : vector<8x128xf32> to vector<1x8x128xf32>
    tpu.vector_store %arg7[%128, %c0_43, %c0_44], %131 {strides = array<i32>} : memref<8x8x128xf32, #tpu.memory_space<vmem>>, vector<1x8x128xf32>,
    %c3_i32 = arith.constant 3 : i32
    %132 = arith.index_cast %c3_i32 : i32 to index
    %c0_45 = arith.constant 0 : index
    %c0_46 = arith.constant 0 : index
    %133 = vector.load %arg8[%132, %c0_45, %c0_46] : memref<8x8x384xf32, #tpu.memory_space<vmem>>, vector<1x8x384xf32>
    %134 = vector.shape_cast %133 : vector<1x8x384xf32> to vector<8x384xf32>
    %cst_47 = arith.constant dense<0.000000e+00> : vector<8x384xf32>
    %135 = tpu.matmul %123, %9, %cst_47 {dimension_numbers = #tpu.dot_dimension_numbers<[1], [0], [0], [1], [0, 0, 1, 1], [], []>} : vector<8x128xf32>, vector<128x384xf32>, vector<8x384xf32> -> vector<8x384xf32>
    %136 = vector.extract_strided_slice %134 {offsets = [0, 0], sizes = [8, 128], strides = [1, 1]} : vector<8x384xf32> to vector<8x128xf32>
    %137 = vector.extract_strided_slice %135 {offsets = [0, 0], sizes = [8, 128], strides = [1, 1]} : vector<8x384xf32> to vector<8x128xf32>
    %138 = arith.addf %136, %137 : vector<8x128xf32>
    %139 = arith.negf %138 : vector<8x128xf32>
    %140 = math.exp %139 : vector<8x128xf32>
    %cst_48 = arith.constant 1.000000e+00 : f32
    %141 = vector.broadcast %cst_48 : f32 to vector<8x128xf32>
    %142 = arith.addf %141, %140 : vector<8x128xf32>
    %143 = arith.divf %141, %142 : vector<8x128xf32>
    %144 = vector.extract_strided_slice %134 {offsets = [0, 128], sizes = [8, 128], strides = [1, 1]} : vector<8x384xf32> to vector<8x128xf32>
    %145 = vector.extract_strided_slice %135 {offsets = [0, 128], sizes = [8, 128], strides = [1, 1]} : vector<8x384xf32> to vector<8x128xf32>
    %146 = arith.addf %144, %145 : vector<8x128xf32>
    %147 = arith.negf %146 : vector<8x128xf32>
    %148 = math.exp %147 : vector<8x128xf32>
    %cst_49 = arith.constant 1.000000e+00 : f32
    %149 = vector.broadcast %cst_49 : f32 to vector<8x128xf32>
    %150 = arith.addf %149, %148 : vector<8x128xf32>
    %151 = arith.divf %149, %150 : vector<8x128xf32>
    %152 = vector.extract_strided_slice %134 {offsets = [0, 256], sizes = [8, 128], strides = [1, 1]} : vector<8x384xf32> to vector<8x128xf32>
    %153 = vector.extract_strided_slice %135 {offsets = [0, 256], sizes = [8, 128], strides = [1, 1]} : vector<8x384xf32> to vector<8x128xf32>
    %154 = vector.broadcast %10 : vector<1x128xf32> to vector<8x128xf32>
    %155 = arith.addf %153, %154 : vector<8x128xf32>
    %156 = arith.mulf %143, %155 : vector<8x128xf32>
    %157 = arith.addf %152, %156 : vector<8x128xf32>
    %158 = math.tanh %157 : vector<8x128xf32>
    %cst_50 = arith.constant 1.000000e+00 : f32
    %159 = vector.broadcast %cst_50 : f32 to vector<8x128xf32>
    %160 = arith.subf %159, %151 : vector<8x128xf32>
    %161 = arith.mulf %160, %158 : vector<8x128xf32>
    %162 = arith.mulf %151, %123 : vector<8x128xf32>
    %163 = arith.addf %161, %162 : vector<8x128xf32>
    %cst_51 = arith.constant -5.000000e+00 : f32
    %cst_52 = arith.constant 5.000000e+00 : f32
    %164 = vector.broadcast %cst_51 : f32 to vector<8x128xf32>
    %165 = arith.maximumf %164, %163 : vector<8x128xf32>
    %166 = vector.broadcast %cst_52 : f32 to vector<8x128xf32>
    %167 = arith.minimumf %166, %165 : vector<8x128xf32>
    %168 = arith.index_cast %c3_i32 : i32 to index
    %c0_53 = arith.constant 0 : index
    %c0_54 = arith.constant 0 : index
    %169 = vector.load %arg7[%168, %c0_53, %c0_54] : memref<8x8x128xf32, #tpu.memory_space<vmem>>, vector<1x8x128xf32>
    %170 = vector.shape_cast %169 : vector<1x8x128xf32> to vector<8x128xf32>
    %171 = vector.shape_cast %167 : vector<8x128xf32> to vector<1x8x128xf32>
    tpu.vector_store %arg7[%168, %c0_53, %c0_54], %171 {strides = array<i32>} : memref<8x8x128xf32, #tpu.memory_space<vmem>>, vector<1x8x128xf32>,
    %c4_i32 = arith.constant 4 : i32
    %172 = arith.index_cast %c4_i32 : i32 to index
    %c0_55 = arith.constant 0 : index
    %c0_56 = arith.constant 0 : index
    %173 = vector.load %arg8[%172, %c0_55, %c0_56] : memref<8x8x384xf32, #tpu.memory_space<vmem>>, vector<1x8x384xf32>
    %174 = vector.shape_cast %173 : vector<1x8x384xf32> to vector<8x384xf32>
    %cst_57 = arith.constant dense<0.000000e+00> : vector<8x384xf32>
    %175 = tpu.matmul %163, %9, %cst_57 {dimension_numbers = #tpu.dot_dimension_numbers<[1], [0], [0], [1], [0, 0, 1, 1], [], []>} : vector<8x128xf32>, vector<128x384xf32>, vector<8x384xf32> -> vector<8x384xf32>
    %176 = vector.extract_strided_slice %174 {offsets = [0, 0], sizes = [8, 128], strides = [1, 1]} : vector<8x384xf32> to vector<8x128xf32>
    %177 = vector.extract_strided_slice %175 {offsets = [0, 0], sizes = [8, 128], strides = [1, 1]} : vector<8x384xf32> to vector<8x128xf32>
    %178 = arith.addf %176, %177 : vector<8x128xf32>
    %179 = arith.negf %178 : vector<8x128xf32>
    %180 = math.exp %179 : vector<8x128xf32>
    %cst_58 = arith.constant 1.000000e+00 : f32
    %181 = vector.broadcast %cst_58 : f32 to vector<8x128xf32>
    %182 = arith.addf %181, %180 : vector<8x128xf32>
    %183 = arith.divf %181, %182 : vector<8x128xf32>
    %184 = vector.extract_strided_slice %174 {offsets = [0, 128], sizes = [8, 128], strides = [1, 1]} : vector<8x384xf32> to vector<8x128xf32>
    %185 = vector.extract_strided_slice %175 {offsets = [0, 128], sizes = [8, 128], strides = [1, 1]} : vector<8x384xf32> to vector<8x128xf32>
    %186 = arith.addf %184, %185 : vector<8x128xf32>
    %187 = arith.negf %186 : vector<8x128xf32>
    %188 = math.exp %187 : vector<8x128xf32>
    %cst_59 = arith.constant 1.000000e+00 : f32
    %189 = vector.broadcast %cst_59 : f32 to vector<8x128xf32>
    %190 = arith.addf %189, %188 : vector<8x128xf32>
    %191 = arith.divf %189, %190 : vector<8x128xf32>
    %192 = vector.extract_strided_slice %174 {offsets = [0, 256], sizes = [8, 128], strides = [1, 1]} : vector<8x384xf32> to vector<8x128xf32>
    %193 = vector.extract_strided_slice %175 {offsets = [0, 256], sizes = [8, 128], strides = [1, 1]} : vector<8x384xf32> to vector<8x128xf32>
    %194 = vector.broadcast %10 : vector<1x128xf32> to vector<8x128xf32>
    %195 = arith.addf %193, %194 : vector<8x128xf32>
    %196 = arith.mulf %183, %195 : vector<8x128xf32>
    %197 = arith.addf %192, %196 : vector<8x128xf32>
    %198 = math.tanh %197 : vector<8x128xf32>
    %cst_60 = arith.constant 1.000000e+00 : f32
    %199 = vector.broadcast %cst_60 : f32 to vector<8x128xf32>
    %200 = arith.subf %199, %191 : vector<8x128xf32>
    %201 = arith.mulf %200, %198 : vector<8x128xf32>
    %202 = arith.mulf %191, %163 : vector<8x128xf32>
    %203 = arith.addf %201, %202 : vector<8x128xf32>
    %cst_61 = arith.constant -5.000000e+00 : f32
    %cst_62 = arith.constant 5.000000e+00 : f32
    %204 = vector.broadcast %cst_61 : f32 to vector<8x128xf32>
    %205 = arith.maximumf %204, %203 : vector<8x128xf32>
    %206 = vector.broadcast %cst_62 : f32 to vector<8x128xf32>
    %207 = arith.minimumf %206, %205 : vector<8x128xf32>
    %208 = arith.index_cast %c4_i32 : i32 to index
    %c0_63 = arith.constant 0 : index
    %c0_64 = arith.constant 0 : index
    %209 = vector.load %arg7[%208, %c0_63, %c0_64] : memref<8x8x128xf32, #tpu.memory_space<vmem>>, vector<1x8x128xf32>
    %210 = vector.shape_cast %209 : vector<1x8x128xf32> to vector<8x128xf32>
    %211 = vector.shape_cast %207 : vector<8x128xf32> to vector<1x8x128xf32>
    tpu.vector_store %arg7[%208, %c0_63, %c0_64], %211 {strides = array<i32>} : memref<8x8x128xf32, #tpu.memory_space<vmem>>, vector<1x8x128xf32>,
    %c5_i32 = arith.constant 5 : i32
    %212 = arith.index_cast %c5_i32 : i32 to index
    %c0_65 = arith.constant 0 : index
    %c0_66 = arith.constant 0 : index
    %213 = vector.load %arg8[%212, %c0_65, %c0_66] : memref<8x8x384xf32, #tpu.memory_space<vmem>>, vector<1x8x384xf32>
    %214 = vector.shape_cast %213 : vector<1x8x384xf32> to vector<8x384xf32>
    %cst_67 = arith.constant dense<0.000000e+00> : vector<8x384xf32>
    %215 = tpu.matmul %203, %9, %cst_67 {dimension_numbers = #tpu.dot_dimension_numbers<[1], [0], [0], [1], [0, 0, 1, 1], [], []>} : vector<8x128xf32>, vector<128x384xf32>, vector<8x384xf32> -> vector<8x384xf32>
    %216 = vector.extract_strided_slice %214 {offsets = [0, 0], sizes = [8, 128], strides = [1, 1]} : vector<8x384xf32> to vector<8x128xf32>
    %217 = vector.extract_strided_slice %215 {offsets = [0, 0], sizes = [8, 128], strides = [1, 1]} : vector<8x384xf32> to vector<8x128xf32>
    %218 = arith.addf %216, %217 : vector<8x128xf32>
    %219 = arith.negf %218 : vector<8x128xf32>
    %220 = math.exp %219 : vector<8x128xf32>
    %cst_68 = arith.constant 1.000000e+00 : f32
    %221 = vector.broadcast %cst_68 : f32 to vector<8x128xf32>
    %222 = arith.addf %221, %220 : vector<8x128xf32>
    %223 = arith.divf %221, %222 : vector<8x128xf32>
    %224 = vector.extract_strided_slice %214 {offsets = [0, 128], sizes = [8, 128], strides = [1, 1]} : vector<8x384xf32> to vector<8x128xf32>
    %225 = vector.extract_strided_slice %215 {offsets = [0, 128], sizes = [8, 128], strides = [1, 1]} : vector<8x384xf32> to vector<8x128xf32>
    %226 = arith.addf %224, %225 : vector<8x128xf32>
    %227 = arith.negf %226 : vector<8x128xf32>
    %228 = math.exp %227 : vector<8x128xf32>
    %cst_69 = arith.constant 1.000000e+00 : f32
    %229 = vector.broadcast %cst_69 : f32 to vector<8x128xf32>
    %230 = arith.addf %229, %228 : vector<8x128xf32>
    %231 = arith.divf %229, %230 : vector<8x128xf32>
    %232 = vector.extract_strided_slice %214 {offsets = [0, 256], sizes = [8, 128], strides = [1, 1]} : vector<8x384xf32> to vector<8x128xf32>
    %233 = vector.extract_strided_slice %215 {offsets = [0, 256], sizes = [8, 128], strides = [1, 1]} : vector<8x384xf32> to vector<8x128xf32>
    %234 = vector.broadcast %10 : vector<1x128xf32> to vector<8x128xf32>
    %235 = arith.addf %233, %234 : vector<8x128xf32>
    %236 = arith.mulf %223, %235 : vector<8x128xf32>
    %237 = arith.addf %232, %236 : vector<8x128xf32>
    %238 = math.tanh %237 : vector<8x128xf32>
    %cst_70 = arith.constant 1.000000e+00 : f32
    %239 = vector.broadcast %cst_70 : f32 to vector<8x128xf32>
    %240 = arith.subf %239, %231 : vector<8x128xf32>
    %241 = arith.mulf %240, %238 : vector<8x128xf32>
    %242 = arith.mulf %231, %203 : vector<8x128xf32>
    %243 = arith.addf %241, %242 : vector<8x128xf32>
    %cst_71 = arith.constant -5.000000e+00 : f32
    %cst_72 = arith.constant 5.000000e+00 : f32
    %244 = vector.broadcast %cst_71 : f32 to vector<8x128xf32>
    %245 = arith.maximumf %244, %243 : vector<8x128xf32>
    %246 = vector.broadcast %cst_72 : f32 to vector<8x128xf32>
    %247 = arith.minimumf %246, %245 : vector<8x128xf32>
    %248 = arith.index_cast %c5_i32 : i32 to index
    %c0_73 = arith.constant 0 : index
    %c0_74 = arith.constant 0 : index
    %249 = vector.load %arg7[%248, %c0_73, %c0_74] : memref<8x8x128xf32, #tpu.memory_space<vmem>>, vector<1x8x128xf32>
    %250 = vector.shape_cast %249 : vector<1x8x128xf32> to vector<8x128xf32>
    %251 = vector.shape_cast %247 : vector<8x128xf32> to vector<1x8x128xf32>
    tpu.vector_store %arg7[%248, %c0_73, %c0_74], %251 {strides = array<i32>} : memref<8x8x128xf32, #tpu.memory_space<vmem>>, vector<1x8x128xf32>,
    %c6_i32 = arith.constant 6 : i32
    %252 = arith.index_cast %c6_i32 : i32 to index
    %c0_75 = arith.constant 0 : index
    %c0_76 = arith.constant 0 : index
    %253 = vector.load %arg8[%252, %c0_75, %c0_76] : memref<8x8x384xf32, #tpu.memory_space<vmem>>, vector<1x8x384xf32>
    %254 = vector.shape_cast %253 : vector<1x8x384xf32> to vector<8x384xf32>
    %cst_77 = arith.constant dense<0.000000e+00> : vector<8x384xf32>
    %255 = tpu.matmul %243, %9, %cst_77 {dimension_numbers = #tpu.dot_dimension_numbers<[1], [0], [0], [1], [0, 0, 1, 1], [], []>} : vector<8x128xf32>, vector<128x384xf32>, vector<8x384xf32> -> vector<8x384xf32>
    %256 = vector.extract_strided_slice %254 {offsets = [0, 0], sizes = [8, 128], strides = [1, 1]} : vector<8x384xf32> to vector<8x128xf32>
    %257 = vector.extract_strided_slice %255 {offsets = [0, 0], sizes = [8, 128], strides = [1, 1]} : vector<8x384xf32> to vector<8x128xf32>
    %258 = arith.addf %256, %257 : vector<8x128xf32>
    %259 = arith.negf %258 : vector<8x128xf32>
    %260 = math.exp %259 : vector<8x128xf32>
    %cst_78 = arith.constant 1.000000e+00 : f32
    %261 = vector.broadcast %cst_78 : f32 to vector<8x128xf32>
    %262 = arith.addf %261, %260 : vector<8x128xf32>
    %263 = arith.divf %261, %262 : vector<8x128xf32>
    %264 = vector.extract_strided_slice %254 {offsets = [0, 128], sizes = [8, 128], strides = [1, 1]} : vector<8x384xf32> to vector<8x128xf32>
    %265 = vector.extract_strided_slice %255 {offsets = [0, 128], sizes = [8, 128], strides = [1, 1]} : vector<8x384xf32> to vector<8x128xf32>
    %266 = arith.addf %264, %265 : vector<8x128xf32>
    %267 = arith.negf %266 : vector<8x128xf32>
    %268 = math.exp %267 : vector<8x128xf32>
    %cst_79 = arith.constant 1.000000e+00 : f32
    %269 = vector.broadcast %cst_79 : f32 to vector<8x128xf32>
    %270 = arith.addf %269, %268 : vector<8x128xf32>
    %271 = arith.divf %269, %270 : vector<8x128xf32>
    %272 = vector.extract_strided_slice %254 {offsets = [0, 256], sizes = [8, 128], strides = [1, 1]} : vector<8x384xf32> to vector<8x128xf32>
    %273 = vector.extract_strided_slice %255 {offsets = [0, 256], sizes = [8, 128], strides = [1, 1]} : vector<8x384xf32> to vector<8x128xf32>
    %274 = vector.broadcast %10 : vector<1x128xf32> to vector<8x128xf32>
    %275 = arith.addf %273, %274 : vector<8x128xf32>
    %276 = arith.mulf %263, %275 : vector<8x128xf32>
    %277 = arith.addf %272, %276 : vector<8x128xf32>
    %278 = math.tanh %277 : vector<8x128xf32>
    %cst_80 = arith.constant 1.000000e+00 : f32
    %279 = vector.broadcast %cst_80 : f32 to vector<8x128xf32>
    %280 = arith.subf %279, %271 : vector<8x128xf32>
    %281 = arith.mulf %280, %278 : vector<8x128xf32>
    %282 = arith.mulf %271, %243 : vector<8x128xf32>
    %283 = arith.addf %281, %282 : vector<8x128xf32>
    %cst_81 = arith.constant -5.000000e+00 : f32
    %cst_82 = arith.constant 5.000000e+00 : f32
    %284 = vector.broadcast %cst_81 : f32 to vector<8x128xf32>
    %285 = arith.maximumf %284, %283 : vector<8x128xf32>
    %286 = vector.broadcast %cst_82 : f32 to vector<8x128xf32>
    %287 = arith.minimumf %286, %285 : vector<8x128xf32>
    %288 = arith.index_cast %c6_i32 : i32 to index
    %c0_83 = arith.constant 0 : index
    %c0_84 = arith.constant 0 : index
    %289 = vector.load %arg7[%288, %c0_83, %c0_84] : memref<8x8x128xf32, #tpu.memory_space<vmem>>, vector<1x8x128xf32>
    %290 = vector.shape_cast %289 : vector<1x8x128xf32> to vector<8x128xf32>
    %291 = vector.shape_cast %287 : vector<8x128xf32> to vector<1x8x128xf32>
    tpu.vector_store %arg7[%288, %c0_83, %c0_84], %291 {strides = array<i32>} : memref<8x8x128xf32, #tpu.memory_space<vmem>>, vector<1x8x128xf32>,
    %c7_i32 = arith.constant 7 : i32
    %292 = arith.index_cast %c7_i32 : i32 to index
    %c0_85 = arith.constant 0 : index
    %c0_86 = arith.constant 0 : index
    %293 = vector.load %arg8[%292, %c0_85, %c0_86] : memref<8x8x384xf32, #tpu.memory_space<vmem>>, vector<1x8x384xf32>
    %294 = vector.shape_cast %293 : vector<1x8x384xf32> to vector<8x384xf32>
    %cst_87 = arith.constant dense<0.000000e+00> : vector<8x384xf32>
    %295 = tpu.matmul %283, %9, %cst_87 {dimension_numbers = #tpu.dot_dimension_numbers<[1], [0], [0], [1], [0, 0, 1, 1], [], []>} : vector<8x128xf32>, vector<128x384xf32>, vector<8x384xf32> -> vector<8x384xf32>
    %296 = vector.extract_strided_slice %294 {offsets = [0, 0], sizes = [8, 128], strides = [1, 1]} : vector<8x384xf32> to vector<8x128xf32>
    %297 = vector.extract_strided_slice %295 {offsets = [0, 0], sizes = [8, 128], strides = [1, 1]} : vector<8x384xf32> to vector<8x128xf32>
    %298 = arith.addf %296, %297 : vector<8x128xf32>
    %299 = arith.negf %298 : vector<8x128xf32>
    %300 = math.exp %299 : vector<8x128xf32>
    %cst_88 = arith.constant 1.000000e+00 : f32
    %301 = vector.broadcast %cst_88 : f32 to vector<8x128xf32>
    %302 = arith.addf %301, %300 : vector<8x128xf32>
    %303 = arith.divf %301, %302 : vector<8x128xf32>
    %304 = vector.extract_strided_slice %294 {offsets = [0, 128], sizes = [8, 128], strides = [1, 1]} : vector<8x384xf32> to vector<8x128xf32>
    %305 = vector.extract_strided_slice %295 {offsets = [0, 128], sizes = [8, 128], strides = [1, 1]} : vector<8x384xf32> to vector<8x128xf32>
    %306 = arith.addf %304, %305 : vector<8x128xf32>
    %307 = arith.negf %306 : vector<8x128xf32>
    %308 = math.exp %307 : vector<8x128xf32>
    %cst_89 = arith.constant 1.000000e+00 : f32
    %309 = vector.broadcast %cst_89 : f32 to vector<8x128xf32>
    %310 = arith.addf %309, %308 : vector<8x128xf32>
    %311 = arith.divf %309, %310 : vector<8x128xf32>
    %312 = vector.extract_strided_slice %294 {offsets = [0, 256], sizes = [8, 128], strides = [1, 1]} : vector<8x384xf32> to vector<8x128xf32>
    %313 = vector.extract_strided_slice %295 {offsets = [0, 256], sizes = [8, 128], strides = [1, 1]} : vector<8x384xf32> to vector<8x128xf32>
    %314 = vector.broadcast %10 : vector<1x128xf32> to vector<8x128xf32>
    %315 = arith.addf %313, %314 : vector<8x128xf32>
    %316 = arith.mulf %303, %315 : vector<8x128xf32>
    %317 = arith.addf %312, %316 : vector<8x128xf32>
    %318 = math.tanh %317 : vector<8x128xf32>
    %cst_90 = arith.constant 1.000000e+00 : f32
    %319 = vector.broadcast %cst_90 : f32 to vector<8x128xf32>
    %320 = arith.subf %319, %311 : vector<8x128xf32>
    %321 = arith.mulf %320, %318 : vector<8x128xf32>
    %322 = arith.mulf %311, %283 : vector<8x128xf32>
    %323 = arith.addf %321, %322 : vector<8x128xf32>
    %cst_91 = arith.constant -5.000000e+00 : f32
    %cst_92 = arith.constant 5.000000e+00 : f32
    %324 = vector.broadcast %cst_91 : f32 to vector<8x128xf32>
    %325 = arith.maximumf %324, %323 : vector<8x128xf32>
    %326 = vector.broadcast %cst_92 : f32 to vector<8x128xf32>
    %327 = arith.minimumf %326, %325 : vector<8x128xf32>
    %328 = arith.index_cast %c7_i32 : i32 to index
    %c0_93 = arith.constant 0 : index
    %c0_94 = arith.constant 0 : index
    %329 = vector.load %arg7[%328, %c0_93, %c0_94] : memref<8x8x128xf32, #tpu.memory_space<vmem>>, vector<1x8x128xf32>
    %330 = vector.shape_cast %329 : vector<1x8x128xf32> to vector<8x128xf32>
    %331 = vector.shape_cast %327 : vector<8x128xf32> to vector<1x8x128xf32>
    tpu.vector_store %arg7[%328, %c0_93, %c0_94], %331 {strides = array<i32>} : memref<8x8x128xf32, #tpu.memory_space<vmem>>, vector<1x8x128xf32>,
    %c8_i32 = arith.constant 8 : i32
    return
  }
  func.func @transform_0(%arg0: i32) -> (i32, i32, i32) {
    %c0_i32 = arith.constant 0 : i32
    %c0_i32_0 = arith.constant 0 : i32
    %c0_i32_1 = arith.constant 0 : i32
    return %c0_i32, %arg0, %c0_i32_0 : i32, i32, i32
  }
  func.func @transform_1(%arg0: i32) -> (i32, i32) {
    %c0_i32 = arith.constant 0 : i32
    %c0_i32_0 = arith.constant 0 : i32
    return %arg0, %c0_i32 : i32, i32
  }
  func.func @transform_2(%arg0: i32) -> (i32, i32) {
    %c0_i32 = arith.constant 0 : i32
    %c0_i32_0 = arith.constant 0 : i32
    %c0_i32_1 = arith.constant 0 : i32
    return %c0_i32, %c0_i32_0 : i32, i32
  }
  func.func @transform_3(%arg0: i32) -> (i32, i32) {
    %c0_i32 = arith.constant 0 : i32
    %c0_i32_0 = arith.constant 0 : i32
    %c0_i32_1 = arith.constant 0 : i32
    return %c0_i32, %c0_i32_0 : i32, i32
  }
  func.func @transform_4(%arg0: i32) -> (i32, i32) {
    %c0_i32 = arith.constant 0 : i32
    %c0_i32_0 = arith.constant 0 : i32
    %c0_i32_1 = arith.constant 0 : i32
    return %c0_i32, %c0_i32_0 : i32, i32
  }
  func.func @transform_5(%arg0: i32) -> (i32, i32) {
    %c0_i32 = arith.constant 0 : i32
    %c0_i32_0 = arith.constant 0 : i32
    %c0_i32_1 = arith.constant 0 : i32
    return %c0_i32, %c0_i32_0 : i32, i32
  }
  func.func @transform_6(%arg0: i32) -> (i32, i32, i32) {
    %c0_i32 = arith.constant 0 : i32
    %c0_i32_0 = arith.constant 0 : i32
    %c0_i32_1 = arith.constant 0 : i32
    return %c0_i32, %arg0, %c0_i32_0 : i32, i32, i32
  }
}

</mosaic_0001>

<bundles_post_ra>
// kernel: tpu_custom_call.1
= control target key start
LH: loop header
LB: loop body
LE: loop exit
PB: predicated region body
PF: predicated region fallthrough
CT: control target
= control target key end

     0   :  { %11 = vsyncpa [#allocation4], 0  ;;  %s3561_s0 = inlined_call_operand.hbm [shape: f32[8,8,16], index: 0, kind: input, shape index: {}]   ;;  %s3562_s1 = inlined_call_operand.hbm [shape: f32[8,128], index: 1, kind: input, shape index: {}]   ;;  %s3563_s2 = inlined_call_operand.hbm [shape: f32[16,384], index: 2, kind: input, shape index: {}]   ;;  %s3564_s3 = inlined_call_operand.vmem [shape: f32[1,384], index: 3, kind: input, shape index: {}]   ;;  %s3565_s4 = inlined_call_operand.hbm [shape: f32[128,384], index: 4, kind: input, shape index: {}]   ;;  %s3566_s5 = inlined_call_operand.vmem [shape: f32[1,128], index: 5, kind: input, shape index: {}]   ;;  %s3567_s6 = inlined_call_operand.hbm [shape: f32[8,8,128], index: 6, kind: output, shape index: {}]  }
   0x1   :  { %12 = vsyncpa [#allocation7], 0 }
   0x2   :  { %13 = vsyncpa [#allocation10], 0 }
   0x3   :  { %14 = vsyncpa [#allocation5], 0  ;;  %s2997_s21 = smov [#allocation6]   ;;  %s2998_s23 = smov [#allocation3]  }
   0x4   :  { %s33_s22 = sshll.u32 %s2997_s21, 4  ;;  %s20_s24 = sshll.u32 %s2998_s23, 4  ;;  %s34_s22 = int_to_ptr.vmem [resolvable:$true] %s33_s22  ;;  %s3044_s24 = int_to_ptr.vmem [resolvable:$true] %s20_s24 }
   0x5   :  { %s2879_s27 = scalar_lea.hbm %s3562_s1, 128 }
   0x6   :  { %p2880_p0 = scmp.ne.s32.totalorder %s3562_s1, %s2879_s27  ;;  %p2883_p1 = scmp.lt.u32.totalorder %s2879_s27, %s3562_s1 }
   0x8   :  { %p2885_p2 = pnand %p2883_p1, %p2880_p0 }
   0xa   :  { %2888 = shalt.err (!%p2885_p2)
}
   0xb   :  { %s2889_s8 = scalar_lea.vmem %s34_s22, 128  ;;  %p2894_p4 = scmp.lt.s32.totalorder %s34_s22, %s34_s22 }
   0xc   :  { %p2890_p3 = scmp.ne.s32.totalorder %s34_s22, %s2889_s8  ;;  %p2895_p5 = scmp.lt.s32.totalorder %s2889_s8, %s2889_s8 }
   0xe   :  { %p2896_p6 = por %p2895_p5, %p2894_p4 }
  0x10   :  { %p2897_p7 = pnand %p2896_p6, %p2890_p3 }
  0x12   :  { %2900 = shalt.err (!%p2897_p7)
}
  0x13   :  { %36 = dma.hbm_to_vmem [thread:$0]  %s3562_s1, 128, %s34_s22, [#allocation7]  }
  0x14   :  { %s2901_s13 = scalar_lea.hbm %s3561_s0, 1024 }
  0x15   :  { %p2902_p8 = scmp.ne.s32.totalorder %s3561_s0, %s2901_s13  ;;  %p2905_p9 = scmp.lt.u32.totalorder %s2901_s13, %s3561_s0 }
  0x17   :  { %p2907_p10 = pnand %p2905_p9, %p2902_p8 }
  0x19   :  { %2910 = shalt.err (!%p2907_p10)
}
  0x1a   :  { %s2911_s18 = scalar_lea.vmem %s3044_s24, 1024  ;;  %p2916_p12 = scmp.lt.s32.totalorder %s3044_s24, %s3044_s24 }
  0x1b   :  { %p2912_p11 = scmp.ne.s32.totalorder %s3044_s24, %s2911_s18  ;;  %p2917_p13 = scmp.lt.s32.totalorder %s2911_s18, %s2911_s18 }
  0x1d   :  { %p2918_p0 = por %p2917_p13, %p2916_p12 }
  0x1f   :  { %p2919_p1 = pnand %p2918_p0, %p2912_p11 }
  0x21   :  { %2922 = shalt.err (!%p2919_p1)
}
  0x22   :  { %s2999_s1 = smov 128   ;;  %s3000_s19 = smov 8  }
  0x23   :  { %26 = dma.hbm_to_vmem [thread:$0]  %s3561_s0, 1024, %s3044_s24, [#allocation4], %s2999_s1, %s2999_s1, %s3000_s19  }
  0x24   :  { %s3001_s22 = smov [#allocation8]   ;;  %s2923_s27 = scalar_lea.hbm %s3563_s2, 768 }
  0x25   :  { %s42_s23 = sshll.u32 %s3001_s22, 4  ;;  %p2924_p2 = scmp.ne.s32.totalorder %s3563_s2, %s2923_s27  ;;  %s43_s23 = int_to_ptr.vmem [resolvable:$true] %s42_s23 }
  0x26   :  { %p2927_p3 = scmp.lt.u32.totalorder %s2923_s27, %s3563_s2 }
  0x28   :  { %p2929_p4 = pnand %p2927_p3, %p2924_p2 }
  0x2a   :  { %2932 = shalt.err (!%p2929_p4)
}
  0x2b   :  { %s2933_s8 = scalar_lea.vmem %s43_s23, 768  ;;  %p2938_p6 = scmp.lt.s32.totalorder %s43_s23, %s43_s23 }
  0x2c   :  { %p2934_p5 = scmp.ne.s32.totalorder %s43_s23, %s2933_s8  ;;  %p2939_p7 = scmp.lt.s32.totalorder %s2933_s8, %s2933_s8 }
  0x2e   :  { %p2940_p8 = por %p2939_p7, %p2938_p6 }
  0x30   :  { %p2941_p9 = pnand %p2940_p8, %p2934_p5 }
  0x32   :  { %2944 = shalt.err (!%p2941_p9)
}
  0x33   :  { %s3002_s0 = smov 384   ;;  %s3003_s24 = smov 24  }
  0x34   :  { %48 = dma.hbm_to_vmem [thread:$0]  %s3563_s2, 768, %s43_s23, [#allocation7], %s3002_s0, %s3002_s0, %s3003_s24  }
  0x35   :  { %s3004_s11 = smov [#allocation9]   ;;  %s2945_s15 = scalar_lea.hbm %s3565_s4, 6144 }
  0x36   :  { %s56_s12 = sshll.u32 %s3004_s11, 4  ;;  %p2946_p10 = scmp.ne.s32.totalorder %s3565_s4, %s2945_s15  ;;  %s57_s12 = int_to_ptr.vmem [resolvable:$true] %s56_s12 }
  0x37   :  { %p2949_p11 = scmp.lt.u32.totalorder %s2945_s15, %s3565_s4 }
  0x39   :  { %p2951_p12 = pnand %p2949_p11, %p2946_p10 }
  0x3b   :  { %2954 = shalt.err (!%p2951_p12)
}
  0x3c   :  { %s2955_s21 = scalar_lea.vmem %s57_s12, 6144  ;;  %p2960_p0 = scmp.lt.s32.totalorder %s57_s12, %s57_s12 }
  0x3d   :  { %p2956_p13 = scmp.ne.s32.totalorder %s57_s12, %s2955_s21  ;;  %p2961_p1 = scmp.lt.s32.totalorder %s2955_s21, %s2955_s21 }
  0x3f   :  { %p2962_p2 = por %p2961_p1, %p2960_p0 }
  0x41   :  { %p2963_p3 = pnand %p2962_p2, %p2956_p13 }
  0x43   :  { %2966 = shalt.err (!%p2963_p3)
}
  0x44   :  { %62 = dma.hbm_to_vmem [thread:$0]  %s3565_s4, 6144, %s57_s12, [#allocation10], %s3002_s0, %s3002_s0, %s3003_s24  }
  0x45   :  { %2989 = dma.done.wait [#allocation4], 1024  }
  0x46   :  { %2990 = vsyncadd [#allocation4], 4294966272 }
  0x47   :  { %2991 = dma.done.wait [#allocation7], 896  }
  0x48   :  { %2992 = vsyncadd [#allocation7], 4294966400 }
  0x49   :  { %2993 = dma.done.wait [#allocation10], 6144  }
  0x4a   :  { %2994 = vsyncadd [#allocation10], 4294961152  ;;  %v3005_v0 = vmov 0.0   ;;  %v86_v1 = vld [vmem:[#allocation8 + $0x8] sm:$0xff]  ;;  %v89_v2 = vld [vmem:[#allocation8 + $0x20] sm:$0xff]  ;;  %vm108_vm0 = vcmask 130048  }
  0x4b   :  { %197 = vmatprep.mubr.f32.mxu0 %v3005_v0  ;;  %v85_v3 = vld [vmem:[#allocation8] sm:$0xff]  ;;  %v2299_v4 = vpack.c.bf16 %v89_v2, %v86_v1  ;;  %v88_v5 = vld [vmem:[#allocation8 + $0x18] sm:$0xff]  ;;  %v379_v9 = vld [vmem:[#allocation9 + $0x20] sm:$0xff]  ;;  %v3006_v48 = vmov 0.0|0.0   ;;  %vm3007_vm1 = vmmov 0  }
  0x4c   :  { %v77_v6 = vld [vmem:[#allocation3] sm:$0xff]  ;;  %v2301_v8 = vpack.c.bf16 %v88_v5, %v85_v3  ;;  %v375_v10 = vld [vmem:[#allocation9] sm:$0xff]  ;;  %v378_v11 = vld [vmem:[#allocation9 + $0x18] sm:$0xff] }
  0x4d   :  { %v376_v7 = vld [vmem:[#allocation9 + $0x8] sm:$0xff]  ;;  %2007 = vmatprep.mubr.msk.f32.mxu1 %vm108_vm0, %v77_v6  ;;  %2300 = vmatprep.subr.bf16.mxu0 %v2299_v4  ;;  %v382_v13 = vld [vmem:[#allocation9 + $0x38] sm:$0xff]  ;;  %v385_v14 = vld [vmem:[#allocation9 + $0x50] sm:$0xff]  ;;  %v3106_v15 = vpack.c.bf16 %v378_v11, %v375_v10 }
  0x4e   :  { %v3104_v12 = vpack.c.bf16 %v379_v9, %v376_v7  ;;  %2302 = vmatpush1.bf16.msra.mxu0 %v2301_v8  ;;  %v3109_v16 = vpack.c.bf16 %v385_v14, %v382_v13  ;;  %v381_v17 = vld [vmem:[#allocation9 + $0x30] sm:$0xff]  ;;  %v384_v18 = vld [vmem:[#allocation9 + $0x48] sm:$0xff]  ;;  %v391_v20 = vld [vmem:[#allocation9 + $0x80] sm:$0xff] }
  0x4f   :  { %v388_v19 = vld [vmem:[#allocation9 + $0x68] sm:$0xff]  ;;  %v78_v21 = vld [vmem:[#allocation3 + $0x8] sm:$0xff]  ;;  %v3114_v22 = vpack.c.bf16 %v384_v18, %v381_v17  ;;  %v387_v24 = vld [vmem:[#allocation9 + $0x60] sm:$0xff] }
  0x50   :  { %2308 = vmatprep.subr.bf16.mxu0 %v3104_v12  ;;  %v3117_v23 = vpack.c.bf16 %v391_v20, %v388_v19  ;;  %v390_v25 = vld [vmem:[#allocation9 + $0x78] sm:$0xff]  ;;  %v397_v27 = vld [vmem:[#allocation9 + $0xb0] sm:$0xff]  ;;  %v87_v28 = vld [vmem:[#allocation8 + $0x10] sm:$0xff] }
  0x51   :  { %1816 = vmatmul.mubr.msk.f32.vlgmr.msra.gmra.mrb[0].mxu0 %vm108_vm0, %v77_v6  ;;  %v394_v26 = vld [vmem:[#allocation9 + $0x98] sm:$0xff]  ;;  %v3122_v31 = vpack.c.bf16 %v390_v25, %v387_v24  ;;  %v393_v34 = vld [vmem:[#allocation9 + $0x90] sm:$0xff]  ;;  %v396_v35 = vld [vmem:[#allocation9 + $0xa8] sm:$0xff] }
  0x52   :  { %2310 = vmatpush1.bf16.msra.mxu0 %v3106_v15  ;;  %203 = vmatprep.mubr.f32.mxu0 %v3005_v0  ;;  %v90_v29 = vld [vmem:[#allocation8 + $0x28] sm:$0xff]  ;;  %v3125_v33 = vpack.c.bf16 %v397_v27, %v394_v26  ;;  %v377_v36 = vld [vmem:[#allocation9 + $0x10] sm:$0xff]  ;;  %v400_v37 = vld [vmem:[#allocation9 + $0xc8] sm:$0xff]  ;;  %v3132_v42 = vpack.c.bf16 %v396_v35, %v393_v34 }
  0x53   :  { %2312 = vmatprep.subr.bf16.mxu0 %v3109_v16  ;;  %v79_v30 = vld [vmem:[#allocation3 + $0x10] sm:$0xff]  ;;  %v2303_v32 = vpack.c.bf16 %v90_v29, %v87_v28  ;;  %v403_v38 = vld [vmem:[#allocation9 + $0xe0] sm:$0xff]  ;;  %v380_v39 = vld [vmem:[#allocation9 + $0x28] sm:$0xff] }
  0x54   :  { %v3128_v40 = vpack.c.bf16 %v380_v39, %v377_v36  ;;  %v80_v41 = vld [vmem:[#allocation3 + $0x18] sm:$0xff]  ;;  %v386_v44 = vld [vmem:[#allocation9 + $0x58] sm:$0xff]  ;;  %v3135_v45 = vpack.c.bf16 %v403_v38, %v400_v37  ;;  %v409_v50 = vld [vmem:[#allocation9 + $0x110] sm:$0xff]  ;;  %v93_v36 = vlaneseq }
  0x55   :  { %1817 = vmatmul.mubr.msk.f32.gmra.mrb[2].mxu0 %vm108_vm0, %v78_v21  ;;  %2304 = vmatprep.subr.bf16.mxu1 %v2303_v32  ;;  %v383_v43 = vld [vmem:[#allocation9 + $0x40] sm:$0xff]  ;;  %v402_v47 = vld [vmem:[#allocation9 + $0xd8] sm:$0xff]  ;;  %v81_v52 = vld [vmem:[#allocation3 + $0x20] sm:$0xff] }
  0x56   :  { %2314 = vmatpush1.bf16.msra.mxu0 %v3114_v22  ;;  %209 = vmatprep.mubr.f32.mxu0 %v3005_v0  ;;  %v399_v46 = vld [vmem:[#allocation9 + $0xc0] sm:$0xff]  ;;  %v406_v49 = vld [vmem:[#allocation9 + $0xf8] sm:$0xff]  ;;  %v3141_v51 = vpack.c.bf16 %v386_v44, %v383_v43  ;;  %v389_v54 = vld [vmem:[#allocation9 + $0x70] sm:$0xff]  ;;  %v94_v37 = vshrl.u32 %v93_v36, 7 }
  0x57   :  { %2316 = vmatprep.subr.bf16.mxu0 %v3117_v23  ;;  %2306 = vmatpush3.bf16.msra.mxu1 %v2303_v32  ;;  %v3145_v53 = vpack.c.bf16 %v402_v47, %v399_v46  ;;  %v392_v55 = vld [vmem:[#allocation9 + $0x88] sm:$0xff]  ;;  %v3148_v56 = vpack.c.bf16 %v409_v50, %v406_v49  ;;  %v405_v57 = vld [vmem:[#allocation9 + $0xf0] sm:$0xff]  ;;  %v415_v60 = vld [vmem:[#allocation9 + $0x140] sm:$0xff] }
  0x58   :  { %2339 = vmatprep.subr.bf16.mxu1 %v3006_v48  ;;  %v408_v58 = vld [vmem:[#allocation9 + $0x108] sm:$0xff]  ;;  %v3154_v61 = vpack.c.bf16 %v392_v55, %v389_v54  ;;  %v82_v62 = vld [vmem:[#allocation3 + $0x28] sm:$0xff]  ;;  %v395_v1 = vld [vmem:[#allocation9 + $0xa0] sm:$0xff]  ;;  %v103_v38 = vsub.s32 2, %v94_v37  ;;  %v95_v54 = vsub.s32 0, %v94_v37 }
  0x59   :  { %1818 = vmatmul.mubr.msk.f32.gmra.mrb[4].mxu0 %vm108_vm0, %v79_v30  ;;  %v412_v59 = vld [vmem:[#allocation9 + $0x128] sm:$0xff]  ;;  %v3158_v63 = vpack.c.bf16 %v408_v58, %v405_v57  ;;  %v398_v2 = vld [vmem:[#allocation9 + $0xb8] sm:$0xff]  ;;  %v411_v4 = vld [vmem:[#allocation9 + $0x120] sm:$0xff]  ;;  %v99_v57 = vsub.s32 1, %v94_v37 }
  0x5a   :  { %2318 = vmatpush1.bf16.msra.mxu0 %v3122_v31  ;;  %215 = vmatprep.mubr.f32.mxu0 %v3005_v0  ;;  %v3161_v3 = vpack.c.bf16 %v415_v60, %v412_v59  ;;  %v414_v5 = vld [vmem:[#allocation9 + $0x138] sm:$0xff]  ;;  %v421_v7 = vld [vmem:[#allocation9 + $0x170] sm:$0xff]  ;;  %v3167_v8 = vpack.c.bf16 %v398_v2, %v395_v1  ;;  %v404_v13 = vld [vmem:[#allocation9 + $0xe8] sm:$0xff] }
  0x5b   :  { %2320 = vmatprep.subr.bf16.mxu0 %v3125_v33  ;;  %2008 = vmatmul.mubr.msk.f32.vlgmr.msra.gmra.mrb[0].mxu1 %vm108_vm0, %v78_v21  ;;  %v418_v6 = vld [vmem:[#allocation9 + $0x158] sm:$0xff]  ;;  %v3171_v10 = vpack.c.bf16 %v414_v5, %v411_v4  ;;  %v401_v11 = vld [vmem:[#allocation9 + $0xd0] sm:$0xff]  ;;  %v420_v18 = vld [vmem:[#allocation9 + $0x168] sm:$0xff] }
  0x5c   :  { %2341 = vmatpush3.bf16.msra.mxu1 %v3128_v40  ;;  %2010 = vmatprep.mubr.msk.f32.mxu1 %vm108_vm0, %v79_v30  ;;  %v83_v9 = vld [vmem:[#allocation3 + $0x30] sm:$0xff]  ;;  %v3174_v14 = vpack.c.bf16 %v421_v7, %v418_v6  ;;  %v417_v17 = vld [vmem:[#allocation9 + $0x150] sm:$0xff]  ;;  %v3180_v19 = vpack.c.bf16 %v404_v13, %v401_v11  ;;  %v84_v20 = vld [vmem:[#allocation3 + $0x38] sm:$0xff] }
  0x5d   :  { %1819 = vmatmul.mubr.msk.f32.gmra.mrb[6].mxu0 %vm108_vm0, %v80_v41  ;;  %2342 = vmatprep.subr.bf16.mxu1 %v3006_v48  ;;  %v3184_v21 = vpack.c.bf16 %v420_v18, %v417_v17  ;;  %v407_v24 = vld [vmem:[#allocation9 + $0x100] sm:$0xff]  ;;  %v410_v25 = vld [vmem:[#allocation9 + $0x118] sm:$0xff]  ;;  %v3195_v27 = vld [vmem:[#allocation6] sm:$0xff] }
  0x5e   :  { %2322 = vmatpush1.bf16.msra.mxu0 %v3132_v42  ;;  %221 = vmatprep.mubr.f32.mxu0 %v3005_v0  ;;  %v3191_v26 = vpack.c.bf16 %v410_v25, %v407_v24  ;;  %v413_v28 = vld [vmem:[#allocation9 + $0x130] sm:$0xff]  ;;  %v416_v29 = vld [vmem:[#allocation9 + $0x148] sm:$0xff]  ;;  %v419_v32 = vld [vmem:[#allocation9 + $0x160] sm:$0xff] }
  0x5f   :  { %2324 = vmatprep.subr.bf16.mxu0 %v3135_v45  ;;  %2011 = vmatmul.mubr.msk.f32.gmra.mrb[2].mxu1 %vm108_vm0, %v80_v41  ;;  %v3203_v30 = vpack.c.bf16 %v416_v29, %v413_v28  ;;  %v422_v34 = vld [vmem:[#allocation9 + $0x178] sm:$0xff]  ;;  %v91_v39 = vld [vmem:[%s3564_s3] sm:$0x7] }
  0x60   :  { %2344 = vmatpush3.bf16.msra.mxu1 %v3141_v51  ;;  %2013 = vmatprep.mubr.msk.f32.mxu1 %vm108_vm0, %v81_v52  ;;  %v3212_v35 = vpack.c.bf16 %v422_v34, %v419_v32  ;;  %v104_v41 = vrot.slane %v91_v39, %v103_v38  ;;  %v3261_v60 = vrot.slane %v91_v39, %v95_v54  ;;  %v3276_v32 = vld [vmem:[%s3566_s5] ss:$0 sm:$0xff]  ;;  %s3008_s5 = smov [#allocation11]  }
  0x61   :  { %1820 = vmatmul.mubr.msk.f32.gmra.mrb[8].mxu0 %vm108_vm0, %v81_v52  ;;  %2345 = vmatprep.subr.bf16.mxu1 %v3006_v48  ;;  %v3265_v4 = vrot.slane %v91_v39, %v99_v57  ;;  %s1802_s26 = sshll.u32 %s3008_s5, 4  ;;  %s1803_s26 = int_to_ptr.vmem [resolvable:$true] %s1802_s26 }
  0x62   :  { %2326 = vmatpush1.bf16.msra.mxu0 %v3145_v53  ;;  %227 = vmatprep.mubr.f32.mxu0 %v3005_v0  ;;  %s2967_s27 = scalar_lea.vmem %s1803_s26, 1024  ;;  %p2972_p5 = scmp.lt.s32.totalorder %s1803_s26, %s1803_s26 }
  0x63   :  { %2328 = vmatprep.subr.bf16.mxu0 %v3148_v56  ;;  %2014 = vmatmul.mubr.msk.f32.gmra.mrb[4].mxu1 %vm108_vm0, %v82_v62  ;;  %p2968_p4 = scmp.ne.s32.totalorder %s1803_s26, %s2967_s27  ;;  %p2973_p6 = scmp.lt.s32.totalorder %s2967_s27, %s2967_s27 }
  0x64   :  { %2347 = vmatpush3.bf16.msra.mxu1 %v3154_v61  ;;  %2016 = vmatprep.mubr.msk.f32.mxu1 %vm108_vm0, %v83_v9 }
  0x65   :  { %1821 = vmatmul.mubr.msk.f32.gmra.mrb[10].mxu0 %vm108_vm0, %v82_v62  ;;  %2348 = vmatprep.subr.bf16.mxu1 %v3006_v48  ;;  %p2974_p7 = por %p2973_p6, %p2972_p5 }
  0x66   :  { %2330 = vmatpush1.bf16.msra.mxu0 %v3158_v63  ;;  %233 = vmatprep.mubr.f32.mxu0 %v3005_v0 }
  0x67   :  { %2332 = vmatprep.subr.bf16.mxu0 %v3161_v3  ;;  %2017 = vmatmul.mubr.msk.f32.gmra.mrb[6].mxu1 %vm108_vm0, %v84_v20  ;;  %p2975_p8 = pnand %p2974_p7, %p2968_p4 }
  0x68   :  { %2350 = vmatpush3.bf16.msra.mxu1 %v3167_v8  ;;  %2051 = vmatprep.mubr.msk.f32.mxu1 %vm3007_vm1, %v3005_v0 }
  0x69   :  { %1822 = vmatmul.mubr.msk.f32.gmra.mrb[12].mxu0 %vm108_vm0, %v83_v9  ;;  %2351 = vmatprep.subr.bf16.mxu1 %v3006_v48 }
  0x6a   :  { %2334 = vmatpush1.bf16.msra.mxu0 %v3171_v10  ;;  %239 = vmatprep.mubr.f32.mxu0 %v3005_v0 }
  0x6b   :  { %2336 = vmatprep.subr.bf16.mxu0 %v3174_v14 }
  0x6c   :  { %2353 = vmatpush3.bf16.msra.mxu1 %v3180_v19 }
  0x6d   :  { %1823 = vmatmul.mubr.msk.f32.gmra.mrb[14].mxu0 %vm108_vm0, %v84_v20  ;;  %2354 = vmatprep.subr.bf16.mxu1 %v3006_v48 }
  0x6e   :  { %2338 = vmatpush1.bf16.msra.mxu0 %v3184_v21  ;;  %492 = vmatprep.mubr.f32.mxu0 %v3005_v0 }
  0x6f   :  { %2364 = vmatprep.subr.bf16.mxu0 %v3104_v12 }
  0x70   :  { %2356 = vmatpush3.bf16.msra.mxu1 %v3191_v26 }
  0x71   :  { %493 = vmatmul.mubr.f32.vlgmr.msra.gmra.mrb[0].mxu0 %v3195_v27  ;;  %2357 = vmatprep.subr.bf16.mxu1 %v3006_v48 }
  0x72   :  { %2366 = vmatpush1.bf16.msra.mxu0 %v3106_v15  ;;  %668 = vmatprep.mubr.f32.mxu0 %v3005_v0 }
  0x73   :  { %2368 = vmatprep.subr.bf16.mxu0 %v3109_v16 }
  0x74   :  { %2359 = vmatpush3.bf16.msra.mxu1 %v3203_v30 }
  0x75   :  { %2360 = vmatprep.subr.bf16.mxu1 %v3006_v48 }
  0x76   :  { %2370 = vmatpush1.bf16.msra.mxu0 %v3114_v22 }
  0x77   :  { %2372 = vmatprep.subr.bf16.mxu0 %v3117_v23 }
  0x78   :  { %2362 = vmatpush3.bf16.msra.mxu1 %v3212_v35 }
  0x79   :  { %2395 = vmatprep.subr.bf16.mxu1 %v3006_v48 }
  0x7a   :  { %2374 = vmatpush1.bf16.msra.mxu0 %v3122_v31 }
  0x7b   :  { %2052 = vmatmul.mubr.f32.vlgmr.msra.gmra.mrb[8].mxu1 %v3195_v27  ;;  %2376 = vmatprep.subr.bf16.mxu0 %v3125_v33 }
  0x7c   :  { %2397 = vmatpush3.bf16.msra.mxu1 %v3128_v40  ;;  %2086 = vmatprep.mubr.msk.f32.mxu1 %vm3007_vm1, %v3005_v0 }
  0x7d   :  { %2398 = vmatprep.subr.bf16.mxu1 %v3006_v48 }
  0x7e   :  { %2378 = vmatpush1.bf16.msra.mxu0 %v3132_v42 }
  0x7f   :  { %2380 = vmatprep.subr.bf16.mxu0 %v3135_v45 }
  0x80   :  { %2400 = vmatpush3.bf16.msra.mxu1 %v3141_v51 }
  0x81   :  { %2401 = vmatprep.subr.bf16.mxu1 %v3006_v48 }
  0x82   :  { %2382 = vmatpush1.bf16.msra.mxu0 %v3145_v53 }
  0x83   :  { %2384 = vmatprep.subr.bf16.mxu0 %v3148_v56 }
  0x84   :  { %2403 = vmatpush3.bf16.msra.mxu1 %v3154_v61 }
  0x85   :  { %2404 = vmatprep.subr.bf16.mxu1 %v3006_v48 }
  0x86   :  { %2386 = vmatpush1.bf16.msra.mxu0 %v3158_v63 }
  0x87   :  { %2388 = vmatprep.subr.bf16.mxu0 %v3161_v3 }
  0x88   :  { %2406 = vmatpush3.bf16.msra.mxu1 %v3167_v8 }
  0x89   :  { %2407 = vmatprep.subr.bf16.mxu1 %v3006_v48 }
  0x8a   :  { %2390 = vmatpush1.bf16.msra.mxu0 %v3171_v10 }
  0x8b   :  { %2392 = vmatprep.subr.bf16.mxu0 %v3174_v14 }
  0x8c   :  { %2409 = vmatpush3.bf16.msra.mxu1 %v3180_v19 }
  0x8d   :  { %2410 = vmatprep.subr.bf16.mxu1 %v3006_v48 }
  0x8e   :  { %2394 = vmatpush1.bf16.msra.mxu0 %v3184_v21 }
  0x8f   :  { %2420 = vmatprep.subr.bf16.mxu0 %v3104_v12 }
  0x90   :  { %2412 = vmatpush3.bf16.msra.mxu1 %v3191_v26 }
  0x91   :  { %2413 = vmatprep.subr.bf16.mxu1 %v3006_v48 }
  0x94   :  { %2415 = vmatpush3.bf16.msra.mxu1 %v3203_v30 }
  0x95   :  { %2416 = vmatprep.subr.bf16.mxu1 %v3006_v48 }
  0x98   :  { %2418 = vmatpush3.bf16.msra.mxu1 %v3212_v35 }
  0x99   :  { %2451 = vmatprep.subr.bf16.mxu1 %v3006_v48 }
 0x12e   :  { %v2009_v43 = vpop.f32.mrb[0].mxu1 }
 0x12f   :  { %v3253_v44 = vadd.f32 %v2009_v43, %v104_v41  ;;  %v312_v46 = vpop.f32.mrb[1].mxu1 }
 0x130   :  { %v313_v38 = vadd.f32 %v312_v46, %v104_v41 }
 0x132   :  { %v2012_v47 = vpop.f32.mrb[2].mxu1 }
 0x133   :  { %v3255_v49 = vadd.f32 %v2012_v47, %v104_v41  ;;  %v322_v50 = vpop.f32.mrb[3].mxu1 }
 0x134   :  { %v3257_v52 = vadd.f32 %v322_v50, %v104_v41 }
 0x136   :  { %v2015_v55 = vpop.f32.mrb[4].mxu1 }
 0x137   :  { %v3259_v58 = vadd.f32 %v2015_v55, %v104_v41  ;;  %v332_v59 = vpop.f32.mrb[5].mxu1 }
 0x138   :  { %v3263_v62 = vadd.f32 %v332_v59, %v104_v41 }
 0x13a   :  { %v2018_v1 = vpop.f32.mrb[6].mxu1 }
 0x13b   :  { %v3267_v5 = vadd.f32 %v2018_v1, %v104_v41  ;;  %v342_v6 = vpop.f32.mrb[7].mxu1 }
 0x13c   :  { %v3270_v11 = vadd.f32 %v342_v6, %v104_v41 }
 0x144   :  { %v494_v2 = vpop.f32.mrb[0].mxu0 }
 0x145   :  { %v2755_v7 = vadd.f32 %v494_v2, %v3261_v60  ;;  %v496_v9 = vpop.f32.mrb[1].mxu0 }
 0x146   :  { %v2756_v17 = vadd.f32 %v496_v9, %v3265_v4 }
 0x147   :  { %v1832_v13 = vmul.f32 -1.442695, %v2755_v7 }
 0x148   :  { %v1833_v18 = vmul.f32 -1.442695, %v2756_v17 }
 0x149   :  { %2799 = vpow2.f32 %v1832_v13 }
 0x14a   :  { %2801 = vpow2.f32 %v1833_v18 }
 0x14e   :  { %v565_v20 = vpop.f32.mrb[8].mxu1 }
 0x14f   :  { %v2053_v24 = vpop.f32.mrb[9].mxu1  ;;  %v589_v36 = vadd.f32 %v3276_v32, %v565_v20 }
 0x153   :  { %v2800_v25 = vpop.eup %2799 }
 0x154   :  { %v573_v28 = vadd.f32 1.0, %v2800_v25  ;;  %v2802_v29 = vpop.eup %2801 }
 0x155   :  { %v580_v34 = vadd.f32 1.0, %v2802_v29 }
 0x156   :  { %2803 = vrcp.f32 %v573_v28 }
 0x157   :  { %2805 = vrcp.f32 %v580_v34 }
 0x160   :  { %v2804_v37 = vpop.eup %2803 }
 0x161   :  { %v590_v39 = vmul.f32 %v2804_v37, %v589_v36  ;;  %v2806_v47 = vpop.eup %2805 }
 0x162   :  { %v593_v50 = vsub.f32 1.0, %v2806_v47  ;;  %v595_v57 = vmul.f32 %v2806_v47, %v3195_v27 }
 0x163   :  { %v591_v43 = vadd.f32 %v590_v39, %v313_v38 }
 0x165   :  { %2807 = vtanh.f32 %v591_v43 }
 0x16f   :  { %v2808_v54 = vpop.eup %2807 }
 0x170   :  { %v594_v55 = vmul.f32 %v2808_v54, %v593_v50 }
 0x172   :  { %v3280_v59 = vadd.f32 %v595_v57, %v594_v55 }
 0x174   :  { %v1835_v1 = vclamps-f32 %v3280_v59, 5.0  ;;  %669 = vmatmul.mubr.f32.vlgmr.msra.gmra.mrb[2].mxu0 %v3280_v59  ;;  %2087 = vmatmul.mubr.f32.vlgmr.msra.gmra.mrb[10].mxu1 %v3280_v59 }
 0x175   :  { %2422 = vmatpush1.bf16.msra.mxu0 %v3106_v15  ;;  %2453 = vmatpush3.bf16.msra.mxu1 %v3128_v40 }
 0x176   :  { %599 = vst [vmem:[#allocation11] sm:$0xff] %v1835_v1  ;;  %2424 = vmatprep.subr.bf16.mxu0 %v3109_v16  ;;  %2454 = vmatprep.subr.bf16.mxu1 %v3006_v48 }
 0x177   :  { %839 = vmatprep.mubr.f32.mxu0 %v3005_v0  ;;  %2121 = vmatprep.mubr.msk.f32.mxu1 %vm3007_vm1, %v3005_v0 }
 0x179   :  { %2426 = vmatpush1.bf16.msra.mxu0 %v3114_v22  ;;  %2456 = vmatpush3.bf16.msra.mxu1 %v3141_v51 }
 0x17a   :  { %2428 = vmatprep.subr.bf16.mxu0 %v3117_v23  ;;  %2457 = vmatprep.subr.bf16.mxu1 %v3006_v48 }
 0x17d   :  { %2430 = vmatpush1.bf16.msra.mxu0 %v3122_v31  ;;  %2459 = vmatpush3.bf16.msra.mxu1 %v3154_v61 }
 0x17e   :  { %2432 = vmatprep.subr.bf16.mxu0 %v3125_v33  ;;  %2460 = vmatprep.subr.bf16.mxu1 %v3006_v48 }
 0x181   :  { %2434 = vmatpush1.bf16.msra.mxu0 %v3132_v42  ;;  %2462 = vmatpush3.bf16.msra.mxu1 %v3167_v8 }
 0x182   :  { %2436 = vmatprep.subr.bf16.mxu0 %v3135_v45  ;;  %2463 = vmatprep.subr.bf16.mxu1 %v3006_v48 }
 0x185   :  { %2438 = vmatpush1.bf16.msra.mxu0 %v3145_v53  ;;  %2465 = vmatpush3.bf16.msra.mxu1 %v3180_v19 }
 0x186   :  { %2440 = vmatprep.subr.bf16.mxu0 %v3148_v56  ;;  %2466 = vmatprep.subr.bf16.mxu1 %v3006_v48 }
 0x189   :  { %2442 = vmatpush1.bf16.msra.mxu0 %v3158_v63  ;;  %2468 = vmatpush3.bf16.msra.mxu1 %v3191_v26 }
 0x18a   :  { %2444 = vmatprep.subr.bf16.mxu0 %v3161_v3  ;;  %2469 = vmatprep.subr.bf16.mxu1 %v3006_v48 }
 0x18d   :  { %2446 = vmatpush1.bf16.msra.mxu0 %v3171_v10  ;;  %2471 = vmatpush3.bf16.msra.mxu1 %v3203_v30 }
 0x18e   :  { %2448 = vmatprep.subr.bf16.mxu0 %v3174_v14  ;;  %2472 = vmatprep.subr.bf16.mxu1 %v3006_v48 }
 0x191   :  { %2450 = vmatpush1.bf16.msra.mxu0 %v3184_v21  ;;  %2474 = vmatpush3.bf16.msra.mxu1 %v3212_v35 }
 0x192   :  { %2476 = vmatprep.subr.bf16.mxu0 %v3104_v12  ;;  %2507 = vmatprep.subr.bf16.mxu1 %v3006_v48 }
 0x247   :  { %v670_v27 = vpop.f32.mrb[2].mxu0  ;;  %v741_v41 = vpop.f32.mrb[10].mxu1 }
 0x248   :  { %v2757_v46 = vadd.f32 %v670_v27, %v3261_v60  ;;  %v672_v2 = vpop.f32.mrb[3].mxu0  ;;  %v2088_v6 = vpop.f32.mrb[11].mxu1  ;;  %v759_v25 = vadd.f32 %v3276_v32, %v741_v41 }
 0x249   :  { %v2758_v9 = vadd.f32 %v672_v2, %v3265_v4 }
 0x24a   :  { %v1836_v7 = vmul.f32 -1.442695, %v2757_v46 }
 0x24b   :  { %v1837_v13 = vmul.f32 -1.442695, %v2758_v9 }
 0x24c   :  { %2809 = vpow2.f32 %v1836_v7 }
 0x24d   :  { %2811 = vpow2.f32 %v1837_v13 }
 0x256   :  { %v2810_v17 = vpop.eup %2809 }
 0x257   :  { %v749_v18 = vadd.f32 1.0, %v2810_v17  ;;  %v2812_v20 = vpop.eup %2811 }
 0x258   :  { %v756_v24 = vadd.f32 1.0, %v2812_v20 }
 0x259   :  { %2813 = vrcp.f32 %v749_v18 }
 0x25a   :  { %2815 = vrcp.f32 %v756_v24 }
 0x263   :  { %v2814_v28 = vpop.eup %2813 }
 0x264   :  { %v760_v29 = vmul.f32 %v2814_v28, %v759_v25  ;;  %v2816_v36 = vpop.eup %2815 }
 0x265   :  { %v763_v37 = vsub.f32 1.0, %v2816_v36  ;;  %v765_v43 = vmul.f32 %v2816_v36, %v3280_v59 }
 0x266   :  { %v761_v34 = vadd.f32 %v760_v29, %v3253_v44 }
 0x268   :  { %2817 = vtanh.f32 %v761_v34 }
 0x272   :  { %v2818_v38 = vpop.eup %2817 }
 0x273   :  { %v764_v39 = vmul.f32 %v2818_v38, %v763_v37 }
 0x275   :  { %v3325_v47 = vadd.f32 %v765_v43, %v764_v39 }
 0x277   :  { %v1838_v50 = vclamps-f32 %v3325_v47, 5.0  ;;  %840 = vmatmul.mubr.f32.vlgmr.msra.gmra.mrb[4].mxu0 %v3325_v47  ;;  %2122 = vmatmul.mubr.f32.vlgmr.msra.gmra.mrb[12].mxu1 %v3325_v47 }
 0x278   :  { %2478 = vmatpush1.bf16.msra.mxu0 %v3106_v15  ;;  %2509 = vmatpush3.bf16.msra.mxu1 %v3128_v40 }
 0x279   :  { %770 = vst [vmem:[#allocation11 + $0x8] sm:$0xff] %v1838_v50  ;;  %2480 = vmatprep.subr.bf16.mxu0 %v3109_v16  ;;  %2510 = vmatprep.subr.bf16.mxu1 %v3006_v48 }
 0x27a   :  { %1010 = vmatprep.mubr.f32.mxu0 %v3005_v0  ;;  %2156 = vmatprep.mubr.msk.f32.mxu1 %vm3007_vm1, %v3005_v0 }
 0x27c   :  { %2482 = vmatpush1.bf16.msra.mxu0 %v3114_v22  ;;  %2512 = vmatpush3.bf16.msra.mxu1 %v3141_v51 }
 0x27d   :  { %2484 = vmatprep.subr.bf16.mxu0 %v3117_v23  ;;  %2513 = vmatprep.subr.bf16.mxu1 %v3006_v48 }
 0x280   :  { %2486 = vmatpush1.bf16.msra.mxu0 %v3122_v31  ;;  %2515 = vmatpush3.bf16.msra.mxu1 %v3154_v61 }
 0x281   :  { %2488 = vmatprep.subr.bf16.mxu0 %v3125_v33  ;;  %2516 = vmatprep.subr.bf16.mxu1 %v3006_v48 }
 0x284   :  { %2490 = vmatpush1.bf16.msra.mxu0 %v3132_v42  ;;  %2518 = vmatpush3.bf16.msra.mxu1 %v3167_v8 }
 0x285   :  { %2492 = vmatprep.subr.bf16.mxu0 %v3135_v45  ;;  %2519 = vmatprep.subr.bf16.mxu1 %v3006_v48 }
 0x288   :  { %2494 = vmatpush1.bf16.msra.mxu0 %v3145_v53  ;;  %2521 = vmatpush3.bf16.msra.mxu1 %v3180_v19 }
 0x289   :  { %2496 = vmatprep.subr.bf16.mxu0 %v3148_v56  ;;  %2522 = vmatprep.subr.bf16.mxu1 %v3006_v48 }
 0x28c   :  { %2498 = vmatpush1.bf16.msra.mxu0 %v3158_v63  ;;  %2524 = vmatpush3.bf16.msra.mxu1 %v3191_v26 }
 0x28d   :  { %2500 = vmatprep.subr.bf16.mxu0 %v3161_v3  ;;  %2525 = vmatprep.subr.bf16.mxu1 %v3006_v48 }
 0x290   :  { %2502 = vmatpush1.bf16.msra.mxu0 %v3171_v10  ;;  %2527 = vmatpush3.bf16.msra.mxu1 %v3203_v30 }
 0x291   :  { %2504 = vmatprep.subr.bf16.mxu0 %v3174_v14  ;;  %2528 = vmatprep.subr.bf16.mxu1 %v3006_v48 }
 0x294   :  { %2506 = vmatpush1.bf16.msra.mxu0 %v3184_v21  ;;  %2530 = vmatpush3.bf16.msra.mxu1 %v3212_v35 }
 0x295   :  { %2532 = vmatprep.subr.bf16.mxu0 %v3104_v12  ;;  %2563 = vmatprep.subr.bf16.mxu1 %v3006_v48 }
 0x34a   :  { %v841_v44 = vpop.f32.mrb[4].mxu0  ;;  %v912_v54 = vpop.f32.mrb[12].mxu1 }
 0x34b   :  { %v2759_v55 = vadd.f32 %v841_v44, %v3261_v60  ;;  %v843_v57 = vpop.f32.mrb[5].mxu0  ;;  %v2123_v59 = vpop.f32.mrb[13].mxu1  ;;  %v930_v9 = vadd.f32 %v3276_v32, %v912_v54 }
 0x34c   :  { %v2760_v27 = vadd.f32 %v843_v57, %v3265_v4 }
 0x34d   :  { %v1839_v1 = vmul.f32 -1.442695, %v2759_v55 }
 0x34e   :  { %v1840_v41 = vmul.f32 -1.442695, %v2760_v27 }
 0x34f   :  { %2819 = vpow2.f32 %v1839_v1 }
 0x350   :  { %2821 = vpow2.f32 %v1840_v41 }
 0x359   :  { %v2820_v46 = vpop.eup %2819 }
 0x35a   :  { %v920_v2 = vadd.f32 1.0, %v2820_v46  ;;  %v2822_v6 = vpop.eup %2821 }
 0x35b   :  { %v927_v7 = vadd.f32 1.0, %v2822_v6 }
 0x35c   :  { %2823 = vrcp.f32 %v920_v2 }
 0x35d   :  { %2825 = vrcp.f32 %v927_v7 }
 0x366   :  { %v2824_v13 = vpop.eup %2823 }
 0x367   :  { %v931_v17 = vmul.f32 %v2824_v13, %v930_v9  ;;  %v2826_v20 = vpop.eup %2825 }
 0x368   :  { %v934_v24 = vsub.f32 1.0, %v2826_v20  ;;  %v936_v29 = vmul.f32 %v2826_v20, %v3325_v47 }
 0x369   :  { %v932_v18 = vadd.f32 %v931_v17, %v3257_v52 }
 0x36b   :  { %2827 = vtanh.f32 %v932_v18 }
 0x375   :  { %v2828_v25 = vpop.eup %2827 }
 0x376   :  { %v935_v28 = vmul.f32 %v2828_v25, %v934_v24 }
 0x378   :  { %v3370_v34 = vadd.f32 %v936_v29, %v935_v28 }
 0x37a   :  { %v1841_v36 = vclamps-f32 %v3370_v34, 5.0  ;;  %1011 = vmatmul.mubr.f32.vlgmr.msra.gmra.mrb[6].mxu0 %v3370_v34  ;;  %2157 = vmatmul.mubr.f32.vlgmr.msra.gmra.mrb[14].mxu1 %v3370_v34 }
 0x37b   :  { %2534 = vmatpush1.bf16.msra.mxu0 %v3106_v15  ;;  %2565 = vmatpush3.bf16.msra.mxu1 %v3128_v40 }
 0x37c   :  { %941 = vst [vmem:[#allocation11 + $0x10] sm:$0xff] %v1841_v36  ;;  %2536 = vmatprep.subr.bf16.mxu0 %v3109_v16  ;;  %2566 = vmatprep.subr.bf16.mxu1 %v3006_v48 }
 0x37d   :  { %1181 = vmatprep.mubr.f32.mxu0 %v3005_v0  ;;  %2191 = vmatprep.mubr.msk.f32.mxu1 %vm3007_vm1, %v3005_v0 }
 0x37f   :  { %2538 = vmatpush1.bf16.msra.mxu0 %v3114_v22  ;;  %2568 = vmatpush3.bf16.msra.mxu1 %v3141_v51 }
 0x380   :  { %2540 = vmatprep.subr.bf16.mxu0 %v3117_v23  ;;  %2569 = vmatprep.subr.bf16.mxu1 %v3006_v48 }
 0x383   :  { %2542 = vmatpush1.bf16.msra.mxu0 %v3122_v31  ;;  %2571 = vmatpush3.bf16.msra.mxu1 %v3154_v61 }
 0x384   :  { %2544 = vmatprep.subr.bf16.mxu0 %v3125_v33  ;;  %2572 = vmatprep.subr.bf16.mxu1 %v3006_v48 }
 0x387   :  { %2546 = vmatpush1.bf16.msra.mxu0 %v3132_v42  ;;  %2574 = vmatpush3.bf16.msra.mxu1 %v3167_v8 }
 0x388   :  { %2548 = vmatprep.subr.bf16.mxu0 %v3135_v45  ;;  %2575 = vmatprep.subr.bf16.mxu1 %v3006_v48 }
 0x38b   :  { %2550 = vmatpush1.bf16.msra.mxu0 %v3145_v53  ;;  %2577 = vmatpush3.bf16.msra.mxu1 %v3180_v19 }
 0x38c   :  { %2552 = vmatprep.subr.bf16.mxu0 %v3148_v56  ;;  %2578 = vmatprep.subr.bf16.mxu1 %v3006_v48 }
 0x38f   :  { %2554 = vmatpush1.bf16.msra.mxu0 %v3158_v63  ;;  %2580 = vmatpush3.bf16.msra.mxu1 %v3191_v26 }
 0x390   :  { %2556 = vmatprep.subr.bf16.mxu0 %v3161_v3  ;;  %2581 = vmatprep.subr.bf16.mxu1 %v3006_v48 }
 0x393   :  { %2558 = vmatpush1.bf16.msra.mxu0 %v3171_v10  ;;  %2583 = vmatpush3.bf16.msra.mxu1 %v3203_v30 }
 0x394   :  { %2560 = vmatprep.subr.bf16.mxu0 %v3174_v14  ;;  %2584 = vmatprep.subr.bf16.mxu1 %v3006_v48 }
 0x397   :  { %2562 = vmatpush1.bf16.msra.mxu0 %v3184_v21  ;;  %2586 = vmatpush3.bf16.msra.mxu1 %v3212_v35 }
 0x398   :  { %2588 = vmatprep.subr.bf16.mxu0 %v3104_v12  ;;  %2619 = vmatprep.subr.bf16.mxu1 %v3006_v48 }
 0x44d   :  { %v1012_v52 = vpop.f32.mrb[6].mxu0  ;;  %v1083_v37 = vpop.f32.mrb[14].mxu1 }
 0x44e   :  { %v2761_v38 = vadd.f32 %v1012_v52, %v3261_v60  ;;  %v1014_v39 = vpop.f32.mrb[7].mxu0  ;;  %v2158_v43 = vpop.f32.mrb[15].mxu1  ;;  %v1101_v1 = vadd.f32 %v3276_v32, %v1083_v37 }
 0x44f   :  { %v2762_v50 = vadd.f32 %v1014_v39, %v3265_v4 }
 0x450   :  { %v1842_v47 = vmul.f32 -1.442695, %v2761_v38 }
 0x451   :  { %v1843_v44 = vmul.f32 -1.442695, %v2762_v50 }
 0x452   :  { %2829 = vpow2.f32 %v1842_v47 }
 0x453   :  { %2831 = vpow2.f32 %v1843_v44 }
 0x45c   :  { %v2830_v54 = vpop.eup %2829 }
 0x45d   :  { %v1091_v55 = vadd.f32 1.0, %v2830_v54  ;;  %v2832_v57 = vpop.eup %2831 }
 0x45e   :  { %v1098_v59 = vadd.f32 1.0, %v2832_v57 }
 0x45f   :  { %2833 = vrcp.f32 %v1091_v55 }
 0x460   :  { %2835 = vrcp.f32 %v1098_v59 }
 0x469   :  { %v2834_v27 = vpop.eup %2833 }
 0x46a   :  { %v1102_v41 = vmul.f32 %v2834_v27, %v1101_v1  ;;  %v2836_v2 = vpop.eup %2835 }
 0x46b   :  { %v1105_v6 = vsub.f32 1.0, %v2836_v2  ;;  %v1107_v13 = vmul.f32 %v2836_v2, %v3370_v34 }
 0x46c   :  { %v1103_v46 = vadd.f32 %v1102_v41, %v3255_v49 }
 0x46e   :  { %2837 = vtanh.f32 %v1103_v46 }
 0x478   :  { %v2838_v7 = vpop.eup %2837 }
 0x479   :  { %v1106_v9 = vmul.f32 %v2838_v7, %v1105_v6 }
 0x47b   :  { %v3415_v17 = vadd.f32 %v1107_v13, %v1106_v9 }
 0x47d   :  { %v1844_v18 = vclamps-f32 %v3415_v17, 5.0  ;;  %1182 = vmatmul.mubr.f32.vlgmr.msra.gmra.mrb[8].mxu0 %v3415_v17  ;;  %2192 = vmatmul.mubr.f32.vlgmr.msra.gmra.mrb[16].mxu1 %v3415_v17 }
 0x47e   :  { %2590 = vmatpush1.bf16.msra.mxu0 %v3106_v15  ;;  %2621 = vmatpush3.bf16.msra.mxu1 %v3128_v40 }
 0x47f   :  { %1112 = vst [vmem:[#allocation11 + $0x18] sm:$0xff] %v1844_v18  ;;  %2592 = vmatprep.subr.bf16.mxu0 %v3109_v16  ;;  %2622 = vmatprep.subr.bf16.mxu1 %v3006_v48 }
 0x480   :  { %1352 = vmatprep.mubr.f32.mxu0 %v3005_v0  ;;  %2226 = vmatprep.mubr.msk.f32.mxu1 %vm3007_vm1, %v3005_v0 }
 0x482   :  { %2594 = vmatpush1.bf16.msra.mxu0 %v3114_v22  ;;  %2624 = vmatpush3.bf16.msra.mxu1 %v3141_v51 }
 0x483   :  { %2596 = vmatprep.subr.bf16.mxu0 %v3117_v23  ;;  %2625 = vmatprep.subr.bf16.mxu1 %v3006_v48 }
 0x486   :  { %2598 = vmatpush1.bf16.msra.mxu0 %v3122_v31  ;;  %2627 = vmatpush3.bf16.msra.mxu1 %v3154_v61 }
 0x487   :  { %2600 = vmatprep.subr.bf16.mxu0 %v3125_v33  ;;  %2628 = vmatprep.subr.bf16.mxu1 %v3006_v48 }
 0x48a   :  { %2602 = vmatpush1.bf16.msra.mxu0 %v3132_v42  ;;  %2630 = vmatpush3.bf16.msra.mxu1 %v3167_v8 }
 0x48b   :  { %2604 = vmatprep.subr.bf16.mxu0 %v3135_v45  ;;  %2631 = vmatprep.subr.bf16.mxu1 %v3006_v48 }
 0x48e   :  { %2606 = vmatpush1.bf16.msra.mxu0 %v3145_v53  ;;  %2633 = vmatpush3.bf16.msra.mxu1 %v3180_v19 }
 0x48f   :  { %2608 = vmatprep.subr.bf16.mxu0 %v3148_v56  ;;  %2634 = vmatprep.subr.bf16.mxu1 %v3006_v48 }
 0x492   :  { %2610 = vmatpush1.bf16.msra.mxu0 %v3158_v63  ;;  %2636 = vmatpush3.bf16.msra.mxu1 %v3191_v26 }
 0x493   :  { %2612 = vmatprep.subr.bf16.mxu0 %v3161_v3  ;;  %2637 = vmatprep.subr.bf16.mxu1 %v3006_v48 }
 0x496   :  { %2614 = vmatpush1.bf16.msra.mxu0 %v3171_v10  ;;  %2639 = vmatpush3.bf16.msra.mxu1 %v3203_v30 }
 0x497   :  { %2616 = vmatprep.subr.bf16.mxu0 %v3174_v14  ;;  %2640 = vmatprep.subr.bf16.mxu1 %v3006_v48 }
 0x49a   :  { %2618 = vmatpush1.bf16.msra.mxu0 %v3184_v21  ;;  %2642 = vmatpush3.bf16.msra.mxu1 %v3212_v35 }
 0x49b   :  { %2644 = vmatprep.subr.bf16.mxu0 %v3104_v12  ;;  %2675 = vmatprep.subr.bf16.mxu1 %v3006_v48 }
 0x550   :  { %v1183_v49 = vpop.f32.mrb[8].mxu0  ;;  %v1254_v20 = vpop.f32.mrb[16].mxu1 }
 0x551   :  { %v2763_v24 = vadd.f32 %v1183_v49, %v3261_v60  ;;  %v1185_v25 = vpop.f32.mrb[9].mxu0  ;;  %v2193_v28 = vpop.f32.mrb[17].mxu1  ;;  %v1272_v43 = vadd.f32 %v3276_v32, %v1254_v20 }
 0x552   :  { %v2764_v34 = vadd.f32 %v1185_v25, %v3265_v4 }
 0x553   :  { %v1845_v29 = vmul.f32 -1.442695, %v2763_v24 }
 0x554   :  { %v1846_v36 = vmul.f32 -1.442695, %v2764_v34 }
 0x555   :  { %2839 = vpow2.f32 %v1845_v29 }
 0x556   :  { %2841 = vpow2.f32 %v1846_v36 }
 0x55f   :  { %v2840_v52 = vpop.eup %2839 }
 0x560   :  { %v1262_v37 = vadd.f32 1.0, %v2840_v52  ;;  %v2842_v38 = vpop.eup %2841 }
 0x561   :  { %v1269_v39 = vadd.f32 1.0, %v2842_v38 }
 0x562   :  { %2843 = vrcp.f32 %v1262_v37 }
 0x563   :  { %2845 = vrcp.f32 %v1269_v39 }
 0x56c   :  { %v2844_v47 = vpop.eup %2843 }
 0x56d   :  { %v1273_v50 = vmul.f32 %v2844_v47, %v1272_v43  ;;  %v2846_v54 = vpop.eup %2845 }
 0x56e   :  { %v1276_v55 = vsub.f32 1.0, %v2846_v54  ;;  %v1278_v1 = vmul.f32 %v2846_v54, %v3415_v17 }
 0x56f   :  { %v1274_v44 = vadd.f32 %v1273_v50, %v3263_v62 }
 0x571   :  { %2847 = vtanh.f32 %v1274_v44 }
 0x57b   :  { %v2848_v57 = vpop.eup %2847 }
 0x57c   :  { %v1277_v59 = vmul.f32 %v2848_v57, %v1276_v55 }
 0x57e   :  { %v3460_v27 = vadd.f32 %v1278_v1, %v1277_v59 }
 0x580   :  { %v1847_v41 = vclamps-f32 %v3460_v27, 5.0  ;;  %1353 = vmatmul.mubr.f32.vlgmr.msra.gmra.mrb[10].mxu0 %v3460_v27  ;;  %2227 = vmatmul.mubr.f32.vlgmr.msra.gmra.mrb[18].mxu1 %v3460_v27 }
 0x581   :  { %2646 = vmatpush1.bf16.msra.mxu0 %v3106_v15  ;;  %2677 = vmatpush3.bf16.msra.mxu1 %v3128_v40 }
 0x582   :  { %1283 = vst [vmem:[#allocation11 + $0x20] sm:$0xff] %v1847_v41  ;;  %2648 = vmatprep.subr.bf16.mxu0 %v3109_v16  ;;  %2678 = vmatprep.subr.bf16.mxu1 %v3006_v48 }
 0x583   :  { %1523 = vmatprep.mubr.f32.mxu0 %v3005_v0  ;;  %2261 = vmatprep.mubr.msk.f32.mxu1 %vm3007_vm1, %v3005_v0 }
 0x585   :  { %2650 = vmatpush1.bf16.msra.mxu0 %v3114_v22  ;;  %2680 = vmatpush3.bf16.msra.mxu1 %v3141_v51 }
 0x586   :  { %2652 = vmatprep.subr.bf16.mxu0 %v3117_v23  ;;  %2681 = vmatprep.subr.bf16.mxu1 %v3006_v48 }
 0x589   :  { %2654 = vmatpush1.bf16.msra.mxu0 %v3122_v31  ;;  %2683 = vmatpush3.bf16.msra.mxu1 %v3154_v61 }
 0x58a   :  { %2656 = vmatprep.subr.bf16.mxu0 %v3125_v33  ;;  %2684 = vmatprep.subr.bf16.mxu1 %v3006_v48 }
 0x58d   :  { %2658 = vmatpush1.bf16.msra.mxu0 %v3132_v42  ;;  %2686 = vmatpush3.bf16.msra.mxu1 %v3167_v8 }
 0x58e   :  { %2660 = vmatprep.subr.bf16.mxu0 %v3135_v45  ;;  %2687 = vmatprep.subr.bf16.mxu1 %v3006_v48 }
 0x591   :  { %2662 = vmatpush1.bf16.msra.mxu0 %v3145_v53  ;;  %2689 = vmatpush3.bf16.msra.mxu1 %v3180_v19 }
 0x592   :  { %2664 = vmatprep.subr.bf16.mxu0 %v3148_v56  ;;  %2690 = vmatprep.subr.bf16.mxu1 %v3006_v48 }
 0x595   :  { %2666 = vmatpush1.bf16.msra.mxu0 %v3158_v63  ;;  %2692 = vmatpush3.bf16.msra.mxu1 %v3191_v26 }
 0x596   :  { %2668 = vmatprep.subr.bf16.mxu0 %v3161_v3  ;;  %2693 = vmatprep.subr.bf16.mxu1 %v3006_v48 }
 0x599   :  { %2670 = vmatpush1.bf16.msra.mxu0 %v3171_v10  ;;  %2695 = vmatpush3.bf16.msra.mxu1 %v3203_v30 }
 0x59a   :  { %2672 = vmatprep.subr.bf16.mxu0 %v3174_v14  ;;  %2696 = vmatprep.subr.bf16.mxu1 %v3006_v48 }
 0x59d   :  { %2674 = vmatpush1.bf16.msra.mxu0 %v3184_v21  ;;  %2698 = vmatpush3.bf16.msra.mxu1 %v3212_v35 }
 0x59e   :  { %2700 = vmatprep.subr.bf16.mxu0 %v3104_v12  ;;  %2731 = vmatprep.subr.bf16.mxu1 %v3006_v48 }
 0x653   :  { %v1354_v62 = vpop.f32.mrb[10].mxu0  ;;  %v1425_v46 = vpop.f32.mrb[18].mxu1 }
 0x654   :  { %v2765_v2 = vadd.f32 %v1354_v62, %v3261_v60  ;;  %v1356_v6 = vpop.f32.mrb[11].mxu0  ;;  %v2228_v7 = vpop.f32.mrb[19].mxu1  ;;  %v1443_v12 = vadd.f32 %v3276_v32, %v1425_v46 }
 0x655   :  { %v2766_v13 = vadd.f32 %v1356_v6, %v3265_v4 }
 0x656   :  { %v1848_v9 = vmul.f32 -1.442695, %v2765_v2 }
 0x657   :  { %v1849_v17 = vmul.f32 -1.442695, %v2766_v13 }
 0x658   :  { %2849 = vpow2.f32 %v1848_v9 }
 0x659   :  { %2851 = vpow2.f32 %v1849_v17 }
 0x662   :  { %v2850_v18 = vpop.eup %2849 }
 0x663   :  { %v1433_v49 = vadd.f32 1.0, %v2850_v18  ;;  %v2852_v20 = vpop.eup %2851 }
 0x664   :  { %v1440_v24 = vadd.f32 1.0, %v2852_v20 }
 0x665   :  { %2853 = vrcp.f32 %v1433_v49 }
 0x666   :  { %2855 = vrcp.f32 %v1440_v24 }
 0x66f   :  { %v2854_v25 = vpop.eup %2853 }
 0x670   :  { %v1444_v28 = vmul.f32 %v2854_v25, %v1443_v12  ;;  %v2856_v34 = vpop.eup %2855 }
 0x671   :  { %v1447_v36 = vsub.f32 1.0, %v2856_v34  ;;  %v1449_v38 = vmul.f32 %v2856_v34, %v3460_v27 }
 0x672   :  { %v1445_v29 = vadd.f32 %v1444_v28, %v3259_v58 }
 0x674   :  { %2857 = vtanh.f32 %v1445_v29 }
 0x67e   :  { %v2858_v52 = vpop.eup %2857 }
 0x67f   :  { %v1448_v37 = vmul.f32 %v2858_v52, %v1447_v36 }
 0x681   :  { %v1450_v39 = vadd.f32 %v1449_v38, %v1448_v37 }
 0x683   :  { %v1850_v43 = vclamps-f32 %v1450_v39, 5.0  ;;  %1524 = vmatmul.mubr.f32.vlgmr.msra.gmra.mrb[12].mxu0 %v1450_v39  ;;  %2262 = vmatmul.mubr.f32.vlgmr.msra.gmra.mrb[20].mxu1 %v1450_v39 }
 0x684   :  { %2702 = vmatpush1.bf16.msra.mxu0 %v3106_v15  ;;  %2733 = vmatpush3.bf16.msra.mxu1 %v3128_v40 }
 0x685   :  { %1454 = vst [vmem:[#allocation11 + $0x28] sm:$0xff] %v1850_v43  ;;  %2704 = vmatprep.subr.bf16.mxu0 %v3109_v16  ;;  %2734 = vmatprep.subr.bf16.mxu1 %v3006_v48 }
 0x686   :  { %1694 = vmatprep.mubr.f32.mxu0 %v3005_v0  ;;  %2296 = vmatprep.mubr.msk.f32.mxu1 %vm3007_vm1, %v3005_v0 }
 0x688   :  { %2706 = vmatpush1.bf16.msra.mxu0 %v3114_v22  ;;  %2736 = vmatpush3.bf16.msra.mxu1 %v3141_v51 }
 0x689   :  { %2708 = vmatprep.subr.bf16.mxu0 %v3117_v23  ;;  %2737 = vmatprep.subr.bf16.mxu1 %v3006_v48 }
 0x68c   :  { %2710 = vmatpush1.bf16.msra.mxu0 %v3122_v31  ;;  %2739 = vmatpush3.bf16.msra.mxu1 %v3154_v61 }
 0x68d   :  { %2712 = vmatprep.subr.bf16.mxu0 %v3125_v33  ;;  %2740 = vmatprep.subr.bf16.mxu1 %v3006_v48 }
 0x690   :  { %2714 = vmatpush1.bf16.msra.mxu0 %v3132_v42  ;;  %2742 = vmatpush3.bf16.msra.mxu1 %v3167_v8 }
 0x691   :  { %2716 = vmatprep.subr.bf16.mxu0 %v3135_v45  ;;  %2743 = vmatprep.subr.bf16.mxu1 %v3006_v48 }
 0x694   :  { %2718 = vmatpush1.bf16.msra.mxu0 %v3145_v53  ;;  %2745 = vmatpush3.bf16.msra.mxu1 %v3180_v19 }
 0x695   :  { %2720 = vmatprep.subr.bf16.mxu0 %v3148_v56  ;;  %2746 = vmatprep.subr.bf16.mxu1 %v3006_v48 }
 0x698   :  { %2722 = vmatpush1.bf16.msra.mxu0 %v3158_v63  ;;  %2748 = vmatpush3.bf16.msra.mxu1 %v3191_v26 }
 0x699   :  { %2724 = vmatprep.subr.bf16.mxu0 %v3161_v3  ;;  %2749 = vmatprep.subr.bf16.mxu1 %v3006_v48 }
 0x69c   :  { %2726 = vmatpush1.bf16.msra.mxu0 %v3171_v10  ;;  %2751 = vmatpush3.bf16.msra.mxu1 %v3203_v30 }
 0x69d   :  { %2728 = vmatprep.subr.bf16.mxu0 %v3174_v14  ;;  %2752 = vmatprep.subr.bf16.mxu1 %v3006_v48 }
 0x6a0   :  { %2730 = vmatpush1.bf16.msra.mxu0 %v3184_v21  ;;  %2754 = vmatpush3.bf16.msra.mxu1 %v3212_v35 }
 0x756   :  { %v1525_v0 = vpop.f32.mrb[12].mxu0  ;;  %v1596_v15 = vpop.f32.mrb[20].mxu1 }
 0x757   :  { %v2767_v16 = vadd.f32 %v1525_v0, %v3261_v60  ;;  %v1527_v22 = vpop.f32.mrb[13].mxu0  ;;  %v2263_v23 = vpop.f32.mrb[21].mxu1  ;;  %v1614_v53 = vadd.f32 %v3276_v32, %v1596_v15 }
 0x758   :  { %v2768_v33 = vadd.f32 %v1527_v22, %v3265_v4 }
 0x759   :  { %v1851_v31 = vmul.f32 -1.442695, %v2767_v16 }
 0x75a   :  { %v1852_v40 = vmul.f32 -1.442695, %v2768_v33 }
 0x75b   :  { %2859 = vpow2.f32 %v1851_v31 }
 0x75c   :  { %2861 = vpow2.f32 %v1852_v40 }
 0x765   :  { %v2860_v42 = vpop.eup %2859 }
 0x766   :  { %v1604_v45 = vadd.f32 1.0, %v2860_v42  ;;  %v2862_v48 = vpop.eup %2861 }
 0x767   :  { %v1611_v51 = vadd.f32 1.0, %v2862_v48 }
 0x768   :  { %2863 = vrcp.f32 %v1604_v45 }
 0x769   :  { %2865 = vrcp.f32 %v1611_v51 }
 0x772   :  { %v2864_v56 = vpop.eup %2863 }
 0x773   :  { %v1615_v61 = vmul.f32 %v2864_v56, %v1614_v53  ;;  %v2866_v3 = vpop.eup %2865 }
 0x774   :  { %v1618_v8 = vsub.f32 1.0, %v2866_v3  ;;  %v1620_v19 = vmul.f32 %v2866_v3, %v1450_v39 }
 0x775   :  { %v1616_v63 = vadd.f32 %v1615_v61, %v3270_v11 }
 0x777   :  { %2867 = vtanh.f32 %v1616_v63 }
 0x781   :  { %v2868_v10 = vpop.eup %2867 }
 0x782   :  { %v1619_v14 = vmul.f32 %v2868_v10, %v1618_v8 }
 0x784   :  { %v1621_v21 = vadd.f32 %v1620_v19, %v1619_v14 }
 0x786   :  { %v1853_v26 = vclamps-f32 %v1621_v21, 5.0  ;;  %1695 = vmatmul.mubr.f32.vlgmr.msra.gmra.mrb[14].mxu0 %v1621_v21  ;;  %2297 = vmatmul.mubr.f32.vlgmr.msra.gmra.mrb[22].mxu1 %v1621_v21 }
 0x788   :  { %1625 = vst [vmem:[#allocation11 + $0x30] sm:$0xff] %v1853_v26 }
 0x859   :  { %v1696_v30 = vpop.f32.mrb[14].mxu0  ;;  %v1767_v35 = vpop.f32.mrb[22].mxu1 }
 0x85a   :  { %v2769_v58 = vadd.f32 %v1696_v30, %v3261_v60  ;;  %v1698_v47 = vpop.f32.mrb[15].mxu0  ;;  %v2298_v50 = vpop.f32.mrb[23].mxu1  ;;  %v1785_v27 = vadd.f32 %v3276_v32, %v1767_v35 }
 0x85b   :  { %v2770_v11 = vadd.f32 %v1698_v47, %v3265_v4 }
 0x85c   :  { %v1854_v44 = vmul.f32 -1.442695, %v2769_v58 }
 0x85d   :  { %v1855_v54 = vmul.f32 -1.442695, %v2770_v11 }
 0x85e   :  { %2869 = vpow2.f32 %v1854_v44 }
 0x85f   :  { %2871 = vpow2.f32 %v1855_v54 }
 0x868   :  { %v2870_v55 = vpop.eup %2869 }
 0x869   :  { %v1775_v57 = vadd.f32 1.0, %v2870_v55  ;;  %v2872_v59 = vpop.eup %2871 }
 0x86a   :  { %v1782_v1 = vadd.f32 1.0, %v2872_v59 }
 0x86b   :  { %2873 = vrcp.f32 %v1775_v57 }
 0x86c   :  { %2875 = vrcp.f32 %v1782_v1 }
 0x875   :  { %v2874_v41 = vpop.eup %2873 }
 0x876   :  { %v1786_v62 = vmul.f32 %v2874_v41, %v1785_v27  ;;  %v2876_v46 = vpop.eup %2875 }
 0x877   :  { %v1789_v2 = vsub.f32 1.0, %v2876_v46  ;;  %v1791_v7 = vmul.f32 %v2876_v46, %v1621_v21 }
 0x878   :  { %v1787_v60 = vadd.f32 %v1786_v62, %v3267_v5 }
 0x87a   :  { %2877 = vtanh.f32 %v1787_v60 }
 0x884   :  { %v2878_v6 = vpop.eup %2877 }
 0x885   :  { %v1790_v4 = vmul.f32 %v2878_v6, %v1789_v2 }
 0x887   :  { %v1792_v9 = vadd.f32 %v1791_v7, %v1790_v4 }
 0x889   :  { %v1856_v13 = vclamps-f32 %v1792_v9, 5.0 }
 0x88b   :  { %1796 = vst [vmem:[#allocation11 + $0x38] sm:$0xff] %v1856_v13 }
 0x88c   :  { %2978 = shalt.err (!%p2975_p8)
}
 0x88d   :  { %s2979_s30 = scalar_lea.hbm %s3567_s6, 1024 }
 0x88e   :  { %p2980_p9 = scmp.ne.s32.totalorder %s3567_s6, %s2979_s30  ;;  %p2983_p10 = scmp.lt.u32.totalorder %s2979_s30, %s3567_s6 }
 0x890   :  { %p2985_p11 = pnand %p2983_p10, %p2980_p9 }
 0x892   :  { %2988 = shalt.err (!%p2985_p11)
}
 0x893   :  { %1808 = dma.vmem_to_hbm [thread:$0]  %s1803_s26, 1024, %s3567_s6, [#allocation5], %s2999_s1, %s2999_s1, %s3000_s19  }
 0x894   :  { %2995 = dma.done.wait [#allocation5], 1024  }
 0x895   :  { %2996 = vsyncadd [#allocation5], 4294966272 }
 0x896   :  { %1812 = vsyncpa [#allocation4], 1 }
 0x897   :  { %1813 = vsyncpa [#allocation7], 1 }
 0x898   :  { %1814 = vsyncpa [#allocation10], 1 }
 0x899   :  { %1815 = vsyncpa [#allocation5], 1 }

</bundles_post_ra>
